<compile_context>
chip_gen: v7x
topology: tpu7x:2x2x1
jax: 0.10.0
libtpu: 0.0.40
codegen_flags: <defaults>
</compile_context>

<pallas_src>
import functools

import jax
import jax.numpy as jnp
from jax import lax
from jax.experimental import pallas as pl
from jax.experimental.pallas import tpu as pltpu

# Architecture implied by the module:
#   INPUT_DIM  = len(state_to_features(...)) = 5   (x, y, coin_x, coin_y, distance)
#   HIDDEN     = 10
#   OUTPUT_DIM = len(ACTIONS) = 6
INPUT_DIM = 5
HIDDEN_DIM = 10
OUTPUT_DIM = 6

GROUP = 1024                 # batch elements per (8, 128) f32 vreg group
TB_MAX = 8 * GROUP           # max batch rows handled per grid step (8192)

# Packed-parameter layout (single SMEM-resident array):
#   rows [0, 10)  : cols [0, 5)  = W1 (out x in, PyTorch layout),  col 10 = b1
#   rows [10, 16) : cols [0, 10) = W2 (out x in),                  col 10 = b2
PACK_ROWS = 16
PACK_COLS = 11
BIAS_COL = 10
W2_ROW0 = HIDDEN_DIM


def _round_up(n: int, m: int) -> int:
    return ((n + m - 1) // m) * m


def _choose_batch_tile(batch: int, tb_max: int) -> int:
    """Batch rows handled per grid step (always a multiple of GROUP)."""
    if batch <= GROUP:
        return GROUP
    # Big tiles amortize the ~0.35us/step grid overhead, but keep the grid
    # length >= 2 so the "parallel" axis can shard across v7x's 2 TensorCores.
    half = (batch + 1) // 2
    return max(GROUP, min(tb_max, _round_up(half, GROUP)))


def _pack_params(w1, b1, w2, b2):
    """Pack W1/b1/W2/b2 (126 floats) into one (16, 11) f32 array."""
    p = jnp.zeros((PACK_ROWS, PACK_COLS), jnp.float32)
    p = p.at[0:HIDDEN_DIM, 0:INPUT_DIM].set(w1.astype(jnp.float32))
    p = p.at[0:HIDDEN_DIM, BIAS_COL].set(b1.astype(jnp.float32))
    p = p.at[W2_ROW0:W2_ROW0 + OUTPUT_DIM, 0:HIDDEN_DIM].set(w2.astype(jnp.float32))
    p = p.at[W2_ROW0:W2_ROW0 + OUTPUT_DIM, BIAS_COL].set(b2.astype(jnp.float32))
    return p


def onecoin_mlp_kernel(p_ref, x_ref, o_ref, *, n_groups):
    """Fused MLP forward on (8,128)-packed batch groups.

    p_ref: (16, 11)               f32, SMEM  (packed W1|b1 ; W2|b2)
    x_ref: (5,  n_groups, 8, 128) f32, VMEM
    o_ref: (6,  n_groups, 8, 128) f32, VMEM
    """

    def group_body(g, carry):
        # The 5 input-feature vregs for this 1024-element batch group.
        # (static k, dynamic g) index only untiled leading dims -> plain
        # address arithmetic, full-vreg loads.
        xk = [x_ref[k, g] for k in range(INPUT_DIM)]

        # Layer 1 + ReLU: h_j = relu(b1[j] + sum_k W1[j,k] * x_k)
        # Weights come from SMEM as scalars and are splatted into the
        # multiply; all vector work is on fully-live (8,128) vregs.
        h = []
        for j in range(HIDDEN_DIM):
            acc = jnp.full((8, 128), p_ref[j, BIAS_COL], dtype=jnp.float32)
            for k in range(INPUT_DIM):
                acc = acc + p_ref[j, k] * xk[k]
            h.append(jnp.maximum(acc, 0.0))

        # Layer 2: y_j = b2[j] + sum_k W2[j,k] * h_k   (stored straight out,
        # one full-vreg store per output feature).
        for j in range(OUTPUT_DIM):
            acc = jnp.full((8, 128), p_ref[W2_ROW0 + j, BIAS_COL], dtype=jnp.float32)
            for k in range(HIDDEN_DIM):
                acc = acc + p_ref[W2_ROW0 + j, k] * h[k]
            o_ref[j, g] = acc
        return carry

    if n_groups == 1:
        group_body(0, 0)
    else:
        # Rolled loop bounds vreg liveness (~25 live vregs) independent of the
        # batch-tile size, so large tiles never spill.
        lax.fori_loop(0, n_groups, group_body, 0)


@functools.partial(jax.jit, static_argnames=("tb_max",))
def onecoin_net_forward_fm(xt, w1, b1, w2, b2, *, tb_max=TB_MAX):
    """Feature-major forward: xt is (5, B) f32, returns (6, B) f32.

    Fast path: avoids the (B,5)<->(5,B) wrapper transposes entirely.
    """
    feat, batch = xt.shape
    assert feat == INPUT_DIM

    tb = _choose_batch_tile(batch, tb_max)
    b_pad = _round_up(batch, tb)
    if b_pad != batch:
        xt = jnp.pad(xt, ((0, 0), (0, b_pad - batch)))

    n_groups_total = b_pad // GROUP
    ng = tb // GROUP

    # Contiguous (free) reshape: batch index b = g*1024 + s*128 + l.
    xg = xt.reshape(INPUT_DIM, n_groups_total, 8, 128)
    params = _pack_params(w1, b1, w2, b2)

    grid = (b_pad // tb,)
    out_g = pl.pallas_call(
        functools.partial(onecoin_mlp_kernel, n_groups=ng),
        out_shape=jax.ShapeDtypeStruct(
            (OUTPUT_DIM, n_groups_total, 8, 128), jnp.float32),
        grid=grid,
        in_specs=[
            # Packed params: one tiny un-blocked SMEM input (replaces four
            # padded VMEM streams and their pipelined double buffers).
            pl.BlockSpec(memory_space=pltpu.MemorySpace.SMEM),
            # Activation stream, tiled along the packed batch-group axis.
            pl.BlockSpec((INPUT_DIM, ng, 8, 128), lambda i: (0, i, 0, 0)),
        ],
        out_specs=pl.BlockSpec((OUTPUT_DIM, ng, 8, 128), lambda i: (0, i, 0, 0)),
        compiler_params=pltpu.CompilerParams(
            # Batch tiles are independent -> shards across v7x's 2 TensorCores;
            # harmless serial loop on v5e/v6e.
            dimension_semantics=("parallel",),
        ),
    )(params, xg)

    out = out_g.reshape(OUTPUT_DIM, b_pad)      # free reshape back
    if b_pad != batch:
        out = out[:, :batch]
    return out


@functools.partial(jax.jit, static_argnames=("tb_max",))
def onecoin_net_forward(x, w1, b1, w2, b2, *, tb_max=TB_MAX):
    """PyTorch-contract forward: x (B, 5) f32 -> (B, 6) f32."""
    # TODO(synk): these two transposes are the only remaining XLA-side HBM
    # round trips; callers that can keep a (features, batch) layout end-to-end
    # should call onecoin_net_forward_fm directly and skip them.
    out_fm = onecoin_net_forward_fm(jnp.transpose(x), w1, b1, w2, b2, tb_max=tb_max)
    return jnp.transpose(out_fm)


def init_params(key):
    """Matches _init_weights: weight ~ N(0, 1), bias = 0 (PyTorch (out, in) layout)."""
    k1, k2 = jax.random.split(key)
    w1 = jax.random.normal(k1, (HIDDEN_DIM, INPUT_DIM), dtype=jnp.float32)
    b1 = jnp.zeros((HIDDEN_DIM,), dtype=jnp.float32)
    w2 = jax.random.normal(k2, (OUTPUT_DIM, HIDDEN_DIM), dtype=jnp.float32)
    b2 = jnp.zeros((OUTPUT_DIM,), dtype=jnp.float32)
    return w1, b1, w2, b2


def reference_forward(x, w1, b1, w2, b2):
    h = jnp.maximum(x @ w1.T + b1, 0.0)
    return h @ w2.T + b2


# TODO(synk): state_to_features / save / train_step are host-side work (dict
# preprocessing, file I/O, optimizer step) with no Pallas equivalent; only the
# forward pass is implemented as a kernel.

if __name__ == "__main__":
    key = jax.random.PRNGKey(0)
    k_params, k_x = jax.random.split(key)
    w1, b1, w2, b2 = init_params(k_params)

    x = None
    ref = None
    # 8     -> tiny RL-inference path (grid=1, 1 group)
    # 1000  -> single tile with padding (grid=1, 1 group)
    # 3000  -> multi-tile, multi-group path (tb=2048, grid=2, 2 groups/step)
    for batch in (8, 1000, 3000):
        kx = jax.random.fold_in(k_x, batch)
        x = jax.random.uniform(kx, (batch, INPUT_DIM), dtype=jnp.float32,
                               minval=0.0, maxval=16.0)
        out = jax.block_until_ready(onecoin_net_forward(x, w1, b1, w2, b2))
        ref = reference_forward(x, w1, b1, w2, b2)
        assert out.shape == (batch, OUTPUT_DIM)
        assert jnp.allclose(out, ref, atol=1e-4, rtol=1e-4), f"mismatch at batch={batch}"

    # Non-zero biases (as after training) exercise the bias-packing path.
    kb1, kb2 = jax.random.split(jax.random.fold_in(k_params, 1))
    b1n = 0.1 * jax.random.normal(kb1, (HIDDEN_DIM,), dtype=jnp.float32)
    b2n = 0.1 * jax.random.normal(kb2, (OUTPUT_DIM,), dtype=jnp.float32)
    out2 = jax.block_until_ready(onecoin_net_forward(x, w1, b1n, w2, b2n))
    ref2 = reference_forward(x, w1, b1n, w2, b2n)
    assert jnp.allclose(out2, ref2, atol=1e-4, rtol=1e-4), "non-zero-bias mismatch"

    # Feature-major fast path (no wrapper transposes) also matches.
    out_fm = jax.block_until_ready(
        onecoin_net_forward_fm(jnp.transpose(x), w1, b1, w2, b2))
    assert jnp.allclose(jnp.transpose(out_fm), ref, atol=1e-4, rtol=1e-4), "fm-path mismatch"

    print("KERNEL_OK")
</pallas_src>

<mosaic_0001>
module attributes {stable_mosaic.version = 11 : i64} {
  func.func @onecoin_mlp_kernel(%arg0: i32, %arg1: memref<16x11xf32, #tpu.memory_space<smem>>, %arg2: memref<5x1x8x128xf32, #tpu.memory_space<vmem>>, %arg3: memref<6x1x8x128xf32, #tpu.memory_space<vmem>>) attributes {dimension_semantics = [#tpu.dimension_semantics<parallel>], iteration_bounds = array<i64: 1>, scalar_prefetch = 0 : i64, scratch_operands = 0 : i64, tpu.core_type = #tpu.core_type<tc>, window_params = [{transform_indices = @transform_0, window_bounds = array<i64: 16, 11>}, {transform_indices = @transform_1, window_bounds = array<i64: 5, 1, 8, 128>}, {transform_indices = @transform_2, window_bounds = array<i64: 6, 1, 8, 128>}]} {
    %c0 = arith.constant 0 : index
    %c0_0 = arith.constant 0 : index
    %c0_1 = arith.constant 0 : index
    %c0_2 = arith.constant 0 : index
    %0 = vector.load %arg2[%c0, %c0_0, %c0_1, %c0_2] : memref<5x1x8x128xf32, #tpu.memory_space<vmem>>, vector<1x1x8x128xf32>
    %1 = vector.shape_cast %0 : vector<1x1x8x128xf32> to vector<8x128xf32>
    %c1 = arith.constant 1 : index
    %c0_3 = arith.constant 0 : index
    %c0_4 = arith.constant 0 : index
    %c0_5 = arith.constant 0 : index
    %2 = vector.load %arg2[%c1, %c0_3, %c0_4, %c0_5] : memref<5x1x8x128xf32, #tpu.memory_space<vmem>>, vector<1x1x8x128xf32>
    %3 = vector.shape_cast %2 : vector<1x1x8x128xf32> to vector<8x128xf32>
    %c2 = arith.constant 2 : index
    %c0_6 = arith.constant 0 : index
    %c0_7 = arith.constant 0 : index
    %c0_8 = arith.constant 0 : index
    %4 = vector.load %arg2[%c2, %c0_6, %c0_7, %c0_8] : memref<5x1x8x128xf32, #tpu.memory_space<vmem>>, vector<1x1x8x128xf32>
    %5 = vector.shape_cast %4 : vector<1x1x8x128xf32> to vector<8x128xf32>
    %c3 = arith.constant 3 : index
    %c0_9 = arith.constant 0 : index
    %c0_10 = arith.constant 0 : index
    %c0_11 = arith.constant 0 : index
    %6 = vector.load %arg2[%c3, %c0_9, %c0_10, %c0_11] : memref<5x1x8x128xf32, #tpu.memory_space<vmem>>, vector<1x1x8x128xf32>
    %7 = vector.shape_cast %6 : vector<1x1x8x128xf32> to vector<8x128xf32>
    %c4 = arith.constant 4 : index
    %c0_12 = arith.constant 0 : index
    %c0_13 = arith.constant 0 : index
    %c0_14 = arith.constant 0 : index
    %8 = vector.load %arg2[%c4, %c0_12, %c0_13, %c0_14] : memref<5x1x8x128xf32, #tpu.memory_space<vmem>>, vector<1x1x8x128xf32>
    %9 = vector.shape_cast %8 : vector<1x1x8x128xf32> to vector<8x128xf32>
    %c0_15 = arith.constant 0 : index
    %c10 = arith.constant 10 : index
    %10 = memref.load %arg1[%c0_15, %c10] : memref<16x11xf32, #tpu.memory_space<smem>>
    %11 = vector.broadcast %10 : f32 to vector<8x128xf32>
    %c0_16 = arith.constant 0 : index
    %c0_17 = arith.constant 0 : index
    %12 = memref.load %arg1[%c0_16, %c0_17] : memref<16x11xf32, #tpu.memory_space<smem>>
    %13 = vector.broadcast %12 : f32 to vector<8x128xf32>
    %14 = arith.mulf %13, %1 : vector<8x128xf32>
    %15 = arith.addf %11, %14 : vector<8x128xf32>
    %c0_18 = arith.constant 0 : index
    %c1_19 = arith.constant 1 : index
    %16 = memref.load %arg1[%c0_18, %c1_19] : memref<16x11xf32, #tpu.memory_space<smem>>
    %17 = vector.broadcast %16 : f32 to vector<8x128xf32>
    %18 = arith.mulf %17, %3 : vector<8x128xf32>
    %19 = arith.addf %15, %18 : vector<8x128xf32>
    %c0_20 = arith.constant 0 : index
    %c2_21 = arith.constant 2 : index
    %20 = memref.load %arg1[%c0_20, %c2_21] : memref<16x11xf32, #tpu.memory_space<smem>>
    %21 = vector.broadcast %20 : f32 to vector<8x128xf32>
    %22 = arith.mulf %21, %5 : vector<8x128xf32>
    %23 = arith.addf %19, %22 : vector<8x128xf32>
    %c0_22 = arith.constant 0 : index
    %c3_23 = arith.constant 3 : index
    %24 = memref.load %arg1[%c0_22, %c3_23] : memref<16x11xf32, #tpu.memory_space<smem>>
    %25 = vector.broadcast %24 : f32 to vector<8x128xf32>
    %26 = arith.mulf %25, %7 : vector<8x128xf32>
    %27 = arith.addf %23, %26 : vector<8x128xf32>
    %c0_24 = arith.constant 0 : index
    %c4_25 = arith.constant 4 : index
    %28 = memref.load %arg1[%c0_24, %c4_25] : memref<16x11xf32, #tpu.memory_space<smem>>
    %29 = vector.broadcast %28 : f32 to vector<8x128xf32>
    %30 = arith.mulf %29, %9 : vector<8x128xf32>
    %31 = arith.addf %27, %30 : vector<8x128xf32>
    %cst = arith.constant 0.000000e+00 : f32
    %32 = vector.broadcast %cst : f32 to vector<8x128xf32>
    %33 = arith.maximumf %31, %32 : vector<8x128xf32>
    %c1_26 = arith.constant 1 : index
    %c10_27 = arith.constant 10 : index
    %34 = memref.load %arg1[%c1_26, %c10_27] : memref<16x11xf32, #tpu.memory_space<smem>>
    %35 = vector.broadcast %34 : f32 to vector<8x128xf32>
    %c1_28 = arith.constant 1 : index
    %c0_29 = arith.constant 0 : index
    %36 = memref.load %arg1[%c1_28, %c0_29] : memref<16x11xf32, #tpu.memory_space<smem>>
    %37 = vector.broadcast %36 : f32 to vector<8x128xf32>
    %38 = arith.mulf %37, %1 : vector<8x128xf32>
    %39 = arith.addf %35, %38 : vector<8x128xf32>
    %c1_30 = arith.constant 1 : index
    %c1_31 = arith.constant 1 : index
    %40 = memref.load %arg1[%c1_30, %c1_31] : memref<16x11xf32, #tpu.memory_space<smem>>
    %41 = vector.broadcast %40 : f32 to vector<8x128xf32>
    %42 = arith.mulf %41, %3 : vector<8x128xf32>
    %43 = arith.addf %39, %42 : vector<8x128xf32>
    %c1_32 = arith.constant 1 : index
    %c2_33 = arith.constant 2 : index
    %44 = memref.load %arg1[%c1_32, %c2_33] : memref<16x11xf32, #tpu.memory_space<smem>>
    %45 = vector.broadcast %44 : f32 to vector<8x128xf32>
    %46 = arith.mulf %45, %5 : vector<8x128xf32>
    %47 = arith.addf %43, %46 : vector<8x128xf32>
    %c1_34 = arith.constant 1 : index
    %c3_35 = arith.constant 3 : index
    %48 = memref.load %arg1[%c1_34, %c3_35] : memref<16x11xf32, #tpu.memory_space<smem>>
    %49 = vector.broadcast %48 : f32 to vector<8x128xf32>
    %50 = arith.mulf %49, %7 : vector<8x128xf32>
    %51 = arith.addf %47, %50 : vector<8x128xf32>
    %c1_36 = arith.constant 1 : index
    %c4_37 = arith.constant 4 : index
    %52 = memref.load %arg1[%c1_36, %c4_37] : memref<16x11xf32, #tpu.memory_space<smem>>
    %53 = vector.broadcast %52 : f32 to vector<8x128xf32>
    %54 = arith.mulf %53, %9 : vector<8x128xf32>
    %55 = arith.addf %51, %54 : vector<8x128xf32>
    %cst_38 = arith.constant 0.000000e+00 : f32
    %56 = vector.broadcast %cst_38 : f32 to vector<8x128xf32>
    %57 = arith.maximumf %55, %56 : vector<8x128xf32>
    %c2_39 = arith.constant 2 : index
    %c10_40 = arith.constant 10 : index
    %58 = memref.load %arg1[%c2_39, %c10_40] : memref<16x11xf32, #tpu.memory_space<smem>>
    %59 = vector.broadcast %58 : f32 to vector<8x128xf32>
    %c2_41 = arith.constant 2 : index
    %c0_42 = arith.constant 0 : index
    %60 = memref.load %arg1[%c2_41, %c0_42] : memref<16x11xf32, #tpu.memory_space<smem>>
    %61 = vector.broadcast %60 : f32 to vector<8x128xf32>
    %62 = arith.mulf %61, %1 : vector<8x128xf32>
    %63 = arith.addf %59, %62 : vector<8x128xf32>
    %c2_43 = arith.constant 2 : index
    %c1_44 = arith.constant 1 : index
    %64 = memref.load %arg1[%c2_43, %c1_44] : memref<16x11xf32, #tpu.memory_space<smem>>
    %65 = vector.broadcast %64 : f32 to vector<8x128xf32>
    %66 = arith.mulf %65, %3 : vector<8x128xf32>
    %67 = arith.addf %63, %66 : vector<8x128xf32>
    %c2_45 = arith.constant 2 : index
    %c2_46 = arith.constant 2 : index
    %68 = memref.load %arg1[%c2_45, %c2_46] : memref<16x11xf32, #tpu.memory_space<smem>>
    %69 = vector.broadcast %68 : f32 to vector<8x128xf32>
    %70 = arith.mulf %69, %5 : vector<8x128xf32>
    %71 = arith.addf %67, %70 : vector<8x128xf32>
    %c2_47 = arith.constant 2 : index
    %c3_48 = arith.constant 3 : index
    %72 = memref.load %arg1[%c2_47, %c3_48] : memref<16x11xf32, #tpu.memory_space<smem>>
    %73 = vector.broadcast %72 : f32 to vector<8x128xf32>
    %74 = arith.mulf %73, %7 : vector<8x128xf32>
    %75 = arith.addf %71, %74 : vector<8x128xf32>
    %c2_49 = arith.constant 2 : index
    %c4_50 = arith.constant 4 : index
    %76 = memref.load %arg1[%c2_49, %c4_50] : memref<16x11xf32, #tpu.memory_space<smem>>
    %77 = vector.broadcast %76 : f32 to vector<8x128xf32>
    %78 = arith.mulf %77, %9 : vector<8x128xf32>
    %79 = arith.addf %75, %78 : vector<8x128xf32>
    %cst_51 = arith.constant 0.000000e+00 : f32
    %80 = vector.broadcast %cst_51 : f32 to vector<8x128xf32>
    %81 = arith.maximumf %79, %80 : vector<8x128xf32>
    %c3_52 = arith.constant 3 : index
    %c10_53 = arith.constant 10 : index
    %82 = memref.load %arg1[%c3_52, %c10_53] : memref<16x11xf32, #tpu.memory_space<smem>>
    %83 = vector.broadcast %82 : f32 to vector<8x128xf32>
    %c3_54 = arith.constant 3 : index
    %c0_55 = arith.constant 0 : index
    %84 = memref.load %arg1[%c3_54, %c0_55] : memref<16x11xf32, #tpu.memory_space<smem>>
    %85 = vector.broadcast %84 : f32 to vector<8x128xf32>
    %86 = arith.mulf %85, %1 : vector<8x128xf32>
    %87 = arith.addf %83, %86 : vector<8x128xf32>
    %c3_56 = arith.constant 3 : index
    %c1_57 = arith.constant 1 : index
    %88 = memref.load %arg1[%c3_56, %c1_57] : memref<16x11xf32, #tpu.memory_space<smem>>
    %89 = vector.broadcast %88 : f32 to vector<8x128xf32>
    %90 = arith.mulf %89, %3 : vector<8x128xf32>
    %91 = arith.addf %87, %90 : vector<8x128xf32>
    %c3_58 = arith.constant 3 : index
    %c2_59 = arith.constant 2 : index
    %92 = memref.load %arg1[%c3_58, %c2_59] : memref<16x11xf32, #tpu.memory_space<smem>>
    %93 = vector.broadcast %92 : f32 to vector<8x128xf32>
    %94 = arith.mulf %93, %5 : vector<8x128xf32>
    %95 = arith.addf %91, %94 : vector<8x128xf32>
    %c3_60 = arith.constant 3 : index
    %c3_61 = arith.constant 3 : index
    %96 = memref.load %arg1[%c3_60, %c3_61] : memref<16x11xf32, #tpu.memory_space<smem>>
    %97 = vector.broadcast %96 : f32 to vector<8x128xf32>
    %98 = arith.mulf %97, %7 : vector<8x128xf32>
    %99 = arith.addf %95, %98 : vector<8x128xf32>
    %c3_62 = arith.constant 3 : index
    %c4_63 = arith.constant 4 : index
    %100 = memref.load %arg1[%c3_62, %c4_63] : memref<16x11xf32, #tpu.memory_space<smem>>
    %101 = vector.broadcast %100 : f32 to vector<8x128xf32>
    %102 = arith.mulf %101, %9 : vector<8x128xf32>
    %103 = arith.addf %99, %102 : vector<8x128xf32>
    %cst_64 = arith.constant 0.000000e+00 : f32
    %104 = vector.broadcast %cst_64 : f32 to vector<8x128xf32>
    %105 = arith.maximumf %103, %104 : vector<8x128xf32>
    %c4_65 = arith.constant 4 : index
    %c10_66 = arith.constant 10 : index
    %106 = memref.load %arg1[%c4_65, %c10_66] : memref<16x11xf32, #tpu.memory_space<smem>>
    %107 = vector.broadcast %106 : f32 to vector<8x128xf32>
    %c4_67 = arith.constant 4 : index
    %c0_68 = arith.constant 0 : index
    %108 = memref.load %arg1[%c4_67, %c0_68] : memref<16x11xf32, #tpu.memory_space<smem>>
    %109 = vector.broadcast %108 : f32 to vector<8x128xf32>
    %110 = arith.mulf %109, %1 : vector<8x128xf32>
    %111 = arith.addf %107, %110 : vector<8x128xf32>
    %c4_69 = arith.constant 4 : index
    %c1_70 = arith.constant 1 : index
    %112 = memref.load %arg1[%c4_69, %c1_70] : memref<16x11xf32, #tpu.memory_space<smem>>
    %113 = vector.broadcast %112 : f32 to vector<8x128xf32>
    %114 = arith.mulf %113, %3 : vector<8x128xf32>
    %115 = arith.addf %111, %114 : vector<8x128xf32>
    %c4_71 = arith.constant 4 : index
    %c2_72 = arith.constant 2 : index
    %116 = memref.load %arg1[%c4_71, %c2_72] : memref<16x11xf32, #tpu.memory_space<smem>>
    %117 = vector.broadcast %116 : f32 to vector<8x128xf32>
    %118 = arith.mulf %117, %5 : vector<8x128xf32>
    %119 = arith.addf %115, %118 : vector<8x128xf32>
    %c4_73 = arith.constant 4 : index
    %c3_74 = arith.constant 3 : index
    %120 = memref.load %arg1[%c4_73, %c3_74] : memref<16x11xf32, #tpu.memory_space<smem>>
    %121 = vector.broadcast %120 : f32 to vector<8x128xf32>
    %122 = arith.mulf %121, %7 : vector<8x128xf32>
    %123 = arith.addf %119, %122 : vector<8x128xf32>
    %c4_75 = arith.constant 4 : index
    %c4_76 = arith.constant 4 : index
    %124 = memref.load %arg1[%c4_75, %c4_76] : memref<16x11xf32, #tpu.memory_space<smem>>
    %125 = vector.broadcast %124 : f32 to vector<8x128xf32>
    %126 = arith.mulf %125, %9 : vector<8x128xf32>
    %127 = arith.addf %123, %126 : vector<8x128xf32>
    %cst_77 = arith.constant 0.000000e+00 : f32
    %128 = vector.broadcast %cst_77 : f32 to vector<8x128xf32>
    %129 = arith.maximumf %127, %128 : vector<8x128xf32>
    %c5 = arith.constant 5 : index
    %c10_78 = arith.constant 10 : index
    %130 = memref.load %arg1[%c5, %c10_78] : memref<16x11xf32, #tpu.memory_space<smem>>
    %131 = vector.broadcast %130 : f32 to vector<8x128xf32>
    %c5_79 = arith.constant 5 : index
    %c0_80 = arith.constant 0 : index
    %132 = memref.load %arg1[%c5_79, %c0_80] : memref<16x11xf32, #tpu.memory_space<smem>>
    %133 = vector.broadcast %132 : f32 to vector<8x128xf32>
    %134 = arith.mulf %133, %1 : vector<8x128xf32>
    %135 = arith.addf %131, %134 : vector<8x128xf32>
    %c5_81 = arith.constant 5 : index
    %c1_82 = arith.constant 1 : index
    %136 = memref.load %arg1[%c5_81, %c1_82] : memref<16x11xf32, #tpu.memory_space<smem>>
    %137 = vector.broadcast %136 : f32 to vector<8x128xf32>
    %138 = arith.mulf %137, %3 : vector<8x128xf32>
    %139 = arith.addf %135, %138 : vector<8x128xf32>
    %c5_83 = arith.constant 5 : index
    %c2_84 = arith.constant 2 : index
    %140 = memref.load %arg1[%c5_83, %c2_84] : memref<16x11xf32, #tpu.memory_space<smem>>
    %141 = vector.broadcast %140 : f32 to vector<8x128xf32>
    %142 = arith.mulf %141, %5 : vector<8x128xf32>
    %143 = arith.addf %139, %142 : vector<8x128xf32>
    %c5_85 = arith.constant 5 : index
    %c3_86 = arith.constant 3 : index
    %144 = memref.load %arg1[%c5_85, %c3_86] : memref<16x11xf32, #tpu.memory_space<smem>>
    %145 = vector.broadcast %144 : f32 to vector<8x128xf32>
    %146 = arith.mulf %145, %7 : vector<8x128xf32>
    %147 = arith.addf %143, %146 : vector<8x128xf32>
    %c5_87 = arith.constant 5 : index
    %c4_88 = arith.constant 4 : index
    %148 = memref.load %arg1[%c5_87, %c4_88] : memref<16x11xf32, #tpu.memory_space<smem>>
    %149 = vector.broadcast %148 : f32 to vector<8x128xf32>
    %150 = arith.mulf %149, %9 : vector<8x128xf32>
    %151 = arith.addf %147, %150 : vector<8x128xf32>
    %cst_89 = arith.constant 0.000000e+00 : f32
    %152 = vector.broadcast %cst_89 : f32 to vector<8x128xf32>
    %153 = arith.maximumf %151, %152 : vector<8x128xf32>
    %c6 = arith.constant 6 : index
    %c10_90 = arith.constant 10 : index
    %154 = memref.load %arg1[%c6, %c10_90] : memref<16x11xf32, #tpu.memory_space<smem>>
    %155 = vector.broadcast %154 : f32 to vector<8x128xf32>
    %c6_91 = arith.constant 6 : index
    %c0_92 = arith.constant 0 : index
    %156 = memref.load %arg1[%c6_91, %c0_92] : memref<16x11xf32, #tpu.memory_space<smem>>
    %157 = vector.broadcast %156 : f32 to vector<8x128xf32>
    %158 = arith.mulf %157, %1 : vector<8x128xf32>
    %159 = arith.addf %155, %158 : vector<8x128xf32>
    %c6_93 = arith.constant 6 : index
    %c1_94 = arith.constant 1 : index
    %160 = memref.load %arg1[%c6_93, %c1_94] : memref<16x11xf32, #tpu.memory_space<smem>>
    %161 = vector.broadcast %160 : f32 to vector<8x128xf32>
    %162 = arith.mulf %161, %3 : vector<8x128xf32>
    %163 = arith.addf %159, %162 : vector<8x128xf32>
    %c6_95 = arith.constant 6 : index
    %c2_96 = arith.constant 2 : index
    %164 = memref.load %arg1[%c6_95, %c2_96] : memref<16x11xf32, #tpu.memory_space<smem>>
    %165 = vector.broadcast %164 : f32 to vector<8x128xf32>
    %166 = arith.mulf %165, %5 : vector<8x128xf32>
    %167 = arith.addf %163, %166 : vector<8x128xf32>
    %c6_97 = arith.constant 6 : index
    %c3_98 = arith.constant 3 : index
    %168 = memref.load %arg1[%c6_97, %c3_98] : memref<16x11xf32, #tpu.memory_space<smem>>
    %169 = vector.broadcast %168 : f32 to vector<8x128xf32>
    %170 = arith.mulf %169, %7 : vector<8x128xf32>
    %171 = arith.addf %167, %170 : vector<8x128xf32>
    %c6_99 = arith.constant 6 : index
    %c4_100 = arith.constant 4 : index
    %172 = memref.load %arg1[%c6_99, %c4_100] : memref<16x11xf32, #tpu.memory_space<smem>>
    %173 = vector.broadcast %172 : f32 to vector<8x128xf32>
    %174 = arith.mulf %173, %9 : vector<8x128xf32>
    %175 = arith.addf %171, %174 : vector<8x128xf32>
    %cst_101 = arith.constant 0.000000e+00 : f32
    %176 = vector.broadcast %cst_101 : f32 to vector<8x128xf32>
    %177 = arith.maximumf %175, %176 : vector<8x128xf32>
    %c7 = arith.constant 7 : index
    %c10_102 = arith.constant 10 : index
    %178 = memref.load %arg1[%c7, %c10_102] : memref<16x11xf32, #tpu.memory_space<smem>>
    %179 = vector.broadcast %178 : f32 to vector<8x128xf32>
    %c7_103 = arith.constant 7 : index
    %c0_104 = arith.constant 0 : index
    %180 = memref.load %arg1[%c7_103, %c0_104] : memref<16x11xf32, #tpu.memory_space<smem>>
    %181 = vector.broadcast %180 : f32 to vector<8x128xf32>
    %182 = arith.mulf %181, %1 : vector<8x128xf32>
    %183 = arith.addf %179, %182 : vector<8x128xf32>
    %c7_105 = arith.constant 7 : index
    %c1_106 = arith.constant 1 : index
    %184 = memref.load %arg1[%c7_105, %c1_106] : memref<16x11xf32, #tpu.memory_space<smem>>
    %185 = vector.broadcast %184 : f32 to vector<8x128xf32>
    %186 = arith.mulf %185, %3 : vector<8x128xf32>
    %187 = arith.addf %183, %186 : vector<8x128xf32>
    %c7_107 = arith.constant 7 : index
    %c2_108 = arith.constant 2 : index
    %188 = memref.load %arg1[%c7_107, %c2_108] : memref<16x11xf32, #tpu.memory_space<smem>>
    %189 = vector.broadcast %188 : f32 to vector<8x128xf32>
    %190 = arith.mulf %189, %5 : vector<8x128xf32>
    %191 = arith.addf %187, %190 : vector<8x128xf32>
    %c7_109 = arith.constant 7 : index
    %c3_110 = arith.constant 3 : index
    %192 = memref.load %arg1[%c7_109, %c3_110] : memref<16x11xf32, #tpu.memory_space<smem>>
    %193 = vector.broadcast %192 : f32 to vector<8x128xf32>
    %194 = arith.mulf %193, %7 : vector<8x128xf32>
    %195 = arith.addf %191, %194 : vector<8x128xf32>
    %c7_111 = arith.constant 7 : index
    %c4_112 = arith.constant 4 : index
    %196 = memref.load %arg1[%c7_111, %c4_112] : memref<16x11xf32, #tpu.memory_space<smem>>
    %197 = vector.broadcast %196 : f32 to vector<8x128xf32>
    %198 = arith.mulf %197, %9 : vector<8x128xf32>
    %199 = arith.addf %195, %198 : vector<8x128xf32>
    %cst_113 = arith.constant 0.000000e+00 : f32
    %200 = vector.broadcast %cst_113 : f32 to vector<8x128xf32>
    %201 = arith.maximumf %199, %200 : vector<8x128xf32>
    %c8 = arith.constant 8 : index
    %c10_114 = arith.constant 10 : index
    %202 = memref.load %arg1[%c8, %c10_114] : memref<16x11xf32, #tpu.memory_space<smem>>
    %203 = vector.broadcast %202 : f32 to vector<8x128xf32>
    %c8_115 = arith.constant 8 : index
    %c0_116 = arith.constant 0 : index
    %204 = memref.load %arg1[%c8_115, %c0_116] : memref<16x11xf32, #tpu.memory_space<smem>>
    %205 = vector.broadcast %204 : f32 to vector<8x128xf32>
    %206 = arith.mulf %205, %1 : vector<8x128xf32>
    %207 = arith.addf %203, %206 : vector<8x128xf32>
    %c8_117 = arith.constant 8 : index
    %c1_118 = arith.constant 1 : index
    %208 = memref.load %arg1[%c8_117, %c1_118] : memref<16x11xf32, #tpu.memory_space<smem>>
    %209 = vector.broadcast %208 : f32 to vector<8x128xf32>
    %210 = arith.mulf %209, %3 : vector<8x128xf32>
    %211 = arith.addf %207, %210 : vector<8x128xf32>
    %c8_119 = arith.constant 8 : index
    %c2_120 = arith.constant 2 : index
    %212 = memref.load %arg1[%c8_119, %c2_120] : memref<16x11xf32, #tpu.memory_space<smem>>
    %213 = vector.broadcast %212 : f32 to vector<8x128xf32>
    %214 = arith.mulf %213, %5 : vector<8x128xf32>
    %215 = arith.addf %211, %214 : vector<8x128xf32>
    %c8_121 = arith.constant 8 : index
    %c3_122 = arith.constant 3 : index
    %216 = memref.load %arg1[%c8_121, %c3_122] : memref<16x11xf32, #tpu.memory_space<smem>>
    %217 = vector.broadcast %216 : f32 to vector<8x128xf32>
    %218 = arith.mulf %217, %7 : vector<8x128xf32>
    %219 = arith.addf %215, %218 : vector<8x128xf32>
    %c8_123 = arith.constant 8 : index
    %c4_124 = arith.constant 4 : index
    %220 = memref.load %arg1[%c8_123, %c4_124] : memref<16x11xf32, #tpu.memory_space<smem>>
    %221 = vector.broadcast %220 : f32 to vector<8x128xf32>
    %222 = arith.mulf %221, %9 : vector<8x128xf32>
    %223 = arith.addf %219, %222 : vector<8x128xf32>
    %cst_125 = arith.constant 0.000000e+00 : f32
    %224 = vector.broadcast %cst_125 : f32 to vector<8x128xf32>
    %225 = arith.maximumf %223, %224 : vector<8x128xf32>
    %c9 = arith.constant 9 : index
    %c10_126 = arith.constant 10 : index
    %226 = memref.load %arg1[%c9, %c10_126] : memref<16x11xf32, #tpu.memory_space<smem>>
    %227 = vector.broadcast %226 : f32 to vector<8x128xf32>
    %c9_127 = arith.constant 9 : index
    %c0_128 = arith.constant 0 : index
    %228 = memref.load %arg1[%c9_127, %c0_128] : memref<16x11xf32, #tpu.memory_space<smem>>
    %229 = vector.broadcast %228 : f32 to vector<8x128xf32>
    %230 = arith.mulf %229, %1 : vector<8x128xf32>
    %231 = arith.addf %227, %230 : vector<8x128xf32>
    %c9_129 = arith.constant 9 : index
    %c1_130 = arith.constant 1 : index
    %232 = memref.load %arg1[%c9_129, %c1_130] : memref<16x11xf32, #tpu.memory_space<smem>>
    %233 = vector.broadcast %232 : f32 to vector<8x128xf32>
    %234 = arith.mulf %233, %3 : vector<8x128xf32>
    %235 = arith.addf %231, %234 : vector<8x128xf32>
    %c9_131 = arith.constant 9 : index
    %c2_132 = arith.constant 2 : index
    %236 = memref.load %arg1[%c9_131, %c2_132] : memref<16x11xf32, #tpu.memory_space<smem>>
    %237 = vector.broadcast %236 : f32 to vector<8x128xf32>
    %238 = arith.mulf %237, %5 : vector<8x128xf32>
    %239 = arith.addf %235, %238 : vector<8x128xf32>
    %c9_133 = arith.constant 9 : index
    %c3_134 = arith.constant 3 : index
    %240 = memref.load %arg1[%c9_133, %c3_134] : memref<16x11xf32, #tpu.memory_space<smem>>
    %241 = vector.broadcast %240 : f32 to vector<8x128xf32>
    %242 = arith.mulf %241, %7 : vector<8x128xf32>
    %243 = arith.addf %239, %242 : vector<8x128xf32>
    %c9_135 = arith.constant 9 : index
    %c4_136 = arith.constant 4 : index
    %244 = memref.load %arg1[%c9_135, %c4_136] : memref<16x11xf32, #tpu.memory_space<smem>>
    %245 = vector.broadcast %244 : f32 to vector<8x128xf32>
    %246 = arith.mulf %245, %9 : vector<8x128xf32>
    %247 = arith.addf %243, %246 : vector<8x128xf32>
    %cst_137 = arith.constant 0.000000e+00 : f32
    %248 = vector.broadcast %cst_137 : f32 to vector<8x128xf32>
    %249 = arith.maximumf %247, %248 : vector<8x128xf32>
    %c10_138 = arith.constant 10 : index
    %c10_139 = arith.constant 10 : index
    %250 = memref.load %arg1[%c10_138, %c10_139] : memref<16x11xf32, #tpu.memory_space<smem>>
    %251 = vector.broadcast %250 : f32 to vector<8x128xf32>
    %c10_140 = arith.constant 10 : index
    %c0_141 = arith.constant 0 : index
    %252 = memref.load %arg1[%c10_140, %c0_141] : memref<16x11xf32, #tpu.memory_space<smem>>
    %253 = vector.broadcast %252 : f32 to vector<8x128xf32>
    %254 = arith.mulf %253, %33 : vector<8x128xf32>
    %255 = arith.addf %251, %254 : vector<8x128xf32>
    %c10_142 = arith.constant 10 : index
    %c1_143 = arith.constant 1 : index
    %256 = memref.load %arg1[%c10_142, %c1_143] : memref<16x11xf32, #tpu.memory_space<smem>>
    %257 = vector.broadcast %256 : f32 to vector<8x128xf32>
    %258 = arith.mulf %257, %57 : vector<8x128xf32>
    %259 = arith.addf %255, %258 : vector<8x128xf32>
    %c10_144 = arith.constant 10 : index
    %c2_145 = arith.constant 2 : index
    %260 = memref.load %arg1[%c10_144, %c2_145] : memref<16x11xf32, #tpu.memory_space<smem>>
    %261 = vector.broadcast %260 : f32 to vector<8x128xf32>
    %262 = arith.mulf %261, %81 : vector<8x128xf32>
    %263 = arith.addf %259, %262 : vector<8x128xf32>
    %c10_146 = arith.constant 10 : index
    %c3_147 = arith.constant 3 : index
    %264 = memref.load %arg1[%c10_146, %c3_147] : memref<16x11xf32, #tpu.memory_space<smem>>
    %265 = vector.broadcast %264 : f32 to vector<8x128xf32>
    %266 = arith.mulf %265, %105 : vector<8x128xf32>
    %267 = arith.addf %263, %266 : vector<8x128xf32>
    %c10_148 = arith.constant 10 : index
    %c4_149 = arith.constant 4 : index
    %268 = memref.load %arg1[%c10_148, %c4_149] : memref<16x11xf32, #tpu.memory_space<smem>>
    %269 = vector.broadcast %268 : f32 to vector<8x128xf32>
    %270 = arith.mulf %269, %129 : vector<8x128xf32>
    %271 = arith.addf %267, %270 : vector<8x128xf32>
    %c10_150 = arith.constant 10 : index
    %c5_151 = arith.constant 5 : index
    %272 = memref.load %arg1[%c10_150, %c5_151] : memref<16x11xf32, #tpu.memory_space<smem>>
    %273 = vector.broadcast %272 : f32 to vector<8x128xf32>
    %274 = arith.mulf %273, %153 : vector<8x128xf32>
    %275 = arith.addf %271, %274 : vector<8x128xf32>
    %c10_152 = arith.constant 10 : index
    %c6_153 = arith.constant 6 : index
    %276 = memref.load %arg1[%c10_152, %c6_153] : memref<16x11xf32, #tpu.memory_space<smem>>
    %277 = vector.broadcast %276 : f32 to vector<8x128xf32>
    %278 = arith.mulf %277, %177 : vector<8x128xf32>
    %279 = arith.addf %275, %278 : vector<8x128xf32>
    %c10_154 = arith.constant 10 : index
    %c7_155 = arith.constant 7 : index
    %280 = memref.load %arg1[%c10_154, %c7_155] : memref<16x11xf32, #tpu.memory_space<smem>>
    %281 = vector.broadcast %280 : f32 to vector<8x128xf32>
    %282 = arith.mulf %281, %201 : vector<8x128xf32>
    %283 = arith.addf %279, %282 : vector<8x128xf32>
    %c10_156 = arith.constant 10 : index
    %c8_157 = arith.constant 8 : index
    %284 = memref.load %arg1[%c10_156, %c8_157] : memref<16x11xf32, #tpu.memory_space<smem>>
    %285 = vector.broadcast %284 : f32 to vector<8x128xf32>
    %286 = arith.mulf %285, %225 : vector<8x128xf32>
    %287 = arith.addf %283, %286 : vector<8x128xf32>
    %c10_158 = arith.constant 10 : index
    %c9_159 = arith.constant 9 : index
    %288 = memref.load %arg1[%c10_158, %c9_159] : memref<16x11xf32, #tpu.memory_space<smem>>
    %289 = vector.broadcast %288 : f32 to vector<8x128xf32>
    %290 = arith.mulf %289, %249 : vector<8x128xf32>
    %291 = arith.addf %287, %290 : vector<8x128xf32>
    %c0_160 = arith.constant 0 : index
    %c0_161 = arith.constant 0 : index
    %c0_162 = arith.constant 0 : index
    %c0_163 = arith.constant 0 : index
    %292 = vector.load %arg3[%c0_160, %c0_161, %c0_162, %c0_163] : memref<6x1x8x128xf32, #tpu.memory_space<vmem>>, vector<1x1x8x128xf32>
    %293 = vector.shape_cast %292 : vector<1x1x8x128xf32> to vector<8x128xf32>
    %294 = vector.shape_cast %291 : vector<8x128xf32> to vector<1x1x8x128xf32>
    tpu.vector_store %arg3[%c0_160, %c0_161, %c0_162, %c0_163], %294 {strides = array<i32>} : memref<6x1x8x128xf32, #tpu.memory_space<vmem>>, vector<1x1x8x128xf32>,
    %c11 = arith.constant 11 : index
    %c10_164 = arith.constant 10 : index
    %295 = memref.load %arg1[%c11, %c10_164] : memref<16x11xf32, #tpu.memory_space<smem>>
    %296 = vector.broadcast %295 : f32 to vector<8x128xf32>
    %c11_165 = arith.constant 11 : index
    %c0_166 = arith.constant 0 : index
    %297 = memref.load %arg1[%c11_165, %c0_166] : memref<16x11xf32, #tpu.memory_space<smem>>
    %298 = vector.broadcast %297 : f32 to vector<8x128xf32>
    %299 = arith.mulf %298, %33 : vector<8x128xf32>
    %300 = arith.addf %296, %299 : vector<8x128xf32>
    %c11_167 = arith.constant 11 : index
    %c1_168 = arith.constant 1 : index
    %301 = memref.load %arg1[%c11_167, %c1_168] : memref<16x11xf32, #tpu.memory_space<smem>>
    %302 = vector.broadcast %301 : f32 to vector<8x128xf32>
    %303 = arith.mulf %302, %57 : vector<8x128xf32>
    %304 = arith.addf %300, %303 : vector<8x128xf32>
    %c11_169 = arith.constant 11 : index
    %c2_170 = arith.constant 2 : index
    %305 = memref.load %arg1[%c11_169, %c2_170] : memref<16x11xf32, #tpu.memory_space<smem>>
    %306 = vector.broadcast %305 : f32 to vector<8x128xf32>
    %307 = arith.mulf %306, %81 : vector<8x128xf32>
    %308 = arith.addf %304, %307 : vector<8x128xf32>
    %c11_171 = arith.constant 11 : index
    %c3_172 = arith.constant 3 : index
    %309 = memref.load %arg1[%c11_171, %c3_172] : memref<16x11xf32, #tpu.memory_space<smem>>
    %310 = vector.broadcast %309 : f32 to vector<8x128xf32>
    %311 = arith.mulf %310, %105 : vector<8x128xf32>
    %312 = arith.addf %308, %311 : vector<8x128xf32>
    %c11_173 = arith.constant 11 : index
    %c4_174 = arith.constant 4 : index
    %313 = memref.load %arg1[%c11_173, %c4_174] : memref<16x11xf32, #tpu.memory_space<smem>>
    %314 = vector.broadcast %313 : f32 to vector<8x128xf32>
    %315 = arith.mulf %314, %129 : vector<8x128xf32>
    %316 = arith.addf %312, %315 : vector<8x128xf32>
    %c11_175 = arith.constant 11 : index
    %c5_176 = arith.constant 5 : index
    %317 = memref.load %arg1[%c11_175, %c5_176] : memref<16x11xf32, #tpu.memory_space<smem>>
    %318 = vector.broadcast %317 : f32 to vector<8x128xf32>
    %319 = arith.mulf %318, %153 : vector<8x128xf32>
    %320 = arith.addf %316, %319 : vector<8x128xf32>
    %c11_177 = arith.constant 11 : index
    %c6_178 = arith.constant 6 : index
    %321 = memref.load %arg1[%c11_177, %c6_178] : memref<16x11xf32, #tpu.memory_space<smem>>
    %322 = vector.broadcast %321 : f32 to vector<8x128xf32>
    %323 = arith.mulf %322, %177 : vector<8x128xf32>
    %324 = arith.addf %320, %323 : vector<8x128xf32>
    %c11_179 = arith.constant 11 : index
    %c7_180 = arith.constant 7 : index
    %325 = memref.load %arg1[%c11_179, %c7_180] : memref<16x11xf32, #tpu.memory_space<smem>>
    %326 = vector.broadcast %325 : f32 to vector<8x128xf32>
    %327 = arith.mulf %326, %201 : vector<8x128xf32>
    %328 = arith.addf %324, %327 : vector<8x128xf32>
    %c11_181 = arith.constant 11 : index
    %c8_182 = arith.constant 8 : index
    %329 = memref.load %arg1[%c11_181, %c8_182] : memref<16x11xf32, #tpu.memory_space<smem>>
    %330 = vector.broadcast %329 : f32 to vector<8x128xf32>
    %331 = arith.mulf %330, %225 : vector<8x128xf32>
    %332 = arith.addf %328, %331 : vector<8x128xf32>
    %c11_183 = arith.constant 11 : index
    %c9_184 = arith.constant 9 : index
    %333 = memref.load %arg1[%c11_183, %c9_184] : memref<16x11xf32, #tpu.memory_space<smem>>
    %334 = vector.broadcast %333 : f32 to vector<8x128xf32>
    %335 = arith.mulf %334, %249 : vector<8x128xf32>
    %336 = arith.addf %332, %335 : vector<8x128xf32>
    %c1_185 = arith.constant 1 : index
    %c0_186 = arith.constant 0 : index
    %c0_187 = arith.constant 0 : index
    %c0_188 = arith.constant 0 : index
    %337 = vector.load %arg3[%c1_185, %c0_186, %c0_187, %c0_188] : memref<6x1x8x128xf32, #tpu.memory_space<vmem>>, vector<1x1x8x128xf32>
    %338 = vector.shape_cast %337 : vector<1x1x8x128xf32> to vector<8x128xf32>
    %339 = vector.shape_cast %336 : vector<8x128xf32> to vector<1x1x8x128xf32>
    tpu.vector_store %arg3[%c1_185, %c0_186, %c0_187, %c0_188], %339 {strides = array<i32>} : memref<6x1x8x128xf32, #tpu.memory_space<vmem>>, vector<1x1x8x128xf32>,
    %c12 = arith.constant 12 : index
    %c10_189 = arith.constant 10 : index
    %340 = memref.load %arg1[%c12, %c10_189] : memref<16x11xf32, #tpu.memory_space<smem>>
    %341 = vector.broadcast %340 : f32 to vector<8x128xf32>
    %c12_190 = arith.constant 12 : index
    %c0_191 = arith.constant 0 : index
    %342 = memref.load %arg1[%c12_190, %c0_191] : memref<16x11xf32, #tpu.memory_space<smem>>
    %343 = vector.broadcast %342 : f32 to vector<8x128xf32>
    %344 = arith.mulf %343, %33 : vector<8x128xf32>
    %345 = arith.addf %341, %344 : vector<8x128xf32>
    %c12_192 = arith.constant 12 : index
    %c1_193 = arith.constant 1 : index
    %346 = memref.load %arg1[%c12_192, %c1_193] : memref<16x11xf32, #tpu.memory_space<smem>>
    %347 = vector.broadcast %346 : f32 to vector<8x128xf32>
    %348 = arith.mulf %347, %57 : vector<8x128xf32>
    %349 = arith.addf %345, %348 : vector<8x128xf32>
    %c12_194 = arith.constant 12 : index
    %c2_195 = arith.constant 2 : index
    %350 = memref.load %arg1[%c12_194, %c2_195] : memref<16x11xf32, #tpu.memory_space<smem>>
    %351 = vector.broadcast %350 : f32 to vector<8x128xf32>
    %352 = arith.mulf %351, %81 : vector<8x128xf32>
    %353 = arith.addf %349, %352 : vector<8x128xf32>
    %c12_196 = arith.constant 12 : index
    %c3_197 = arith.constant 3 : index
    %354 = memref.load %arg1[%c12_196, %c3_197] : memref<16x11xf32, #tpu.memory_space<smem>>
    %355 = vector.broadcast %354 : f32 to vector<8x128xf32>
    %356 = arith.mulf %355, %105 : vector<8x128xf32>
    %357 = arith.addf %353, %356 : vector<8x128xf32>
    %c12_198 = arith.constant 12 : index
    %c4_199 = arith.constant 4 : index
    %358 = memref.load %arg1[%c12_198, %c4_199] : memref<16x11xf32, #tpu.memory_space<smem>>
    %359 = vector.broadcast %358 : f32 to vector<8x128xf32>
    %360 = arith.mulf %359, %129 : vector<8x128xf32>
    %361 = arith.addf %357, %360 : vector<8x128xf32>
    %c12_200 = arith.constant 12 : index
    %c5_201 = arith.constant 5 : index
    %362 = memref.load %arg1[%c12_200, %c5_201] : memref<16x11xf32, #tpu.memory_space<smem>>
    %363 = vector.broadcast %362 : f32 to vector<8x128xf32>
    %364 = arith.mulf %363, %153 : vector<8x128xf32>
    %365 = arith.addf %361, %364 : vector<8x128xf32>
    %c12_202 = arith.constant 12 : index
    %c6_203 = arith.constant 6 : index
    %366 = memref.load %arg1[%c12_202, %c6_203] : memref<16x11xf32, #tpu.memory_space<smem>>
    %367 = vector.broadcast %366 : f32 to vector<8x128xf32>
    %368 = arith.mulf %367, %177 : vector<8x128xf32>
    %369 = arith.addf %365, %368 : vector<8x128xf32>
    %c12_204 = arith.constant 12 : index
    %c7_205 = arith.constant 7 : index
    %370 = memref.load %arg1[%c12_204, %c7_205] : memref<16x11xf32, #tpu.memory_space<smem>>
    %371 = vector.broadcast %370 : f32 to vector<8x128xf32>
    %372 = arith.mulf %371, %201 : vector<8x128xf32>
    %373 = arith.addf %369, %372 : vector<8x128xf32>
    %c12_206 = arith.constant 12 : index
    %c8_207 = arith.constant 8 : index
    %374 = memref.load %arg1[%c12_206, %c8_207] : memref<16x11xf32, #tpu.memory_space<smem>>
    %375 = vector.broadcast %374 : f32 to vector<8x128xf32>
    %376 = arith.mulf %375, %225 : vector<8x128xf32>
    %377 = arith.addf %373, %376 : vector<8x128xf32>
    %c12_208 = arith.constant 12 : index
    %c9_209 = arith.constant 9 : index
    %378 = memref.load %arg1[%c12_208, %c9_209] : memref<16x11xf32, #tpu.memory_space<smem>>
    %379 = vector.broadcast %378 : f32 to vector<8x128xf32>
    %380 = arith.mulf %379, %249 : vector<8x128xf32>
    %381 = arith.addf %377, %380 : vector<8x128xf32>
    %c2_210 = arith.constant 2 : index
    %c0_211 = arith.constant 0 : index
    %c0_212 = arith.constant 0 : index
    %c0_213 = arith.constant 0 : index
    %382 = vector.load %arg3[%c2_210, %c0_211, %c0_212, %c0_213] : memref<6x1x8x128xf32, #tpu.memory_space<vmem>>, vector<1x1x8x128xf32>
    %383 = vector.shape_cast %382 : vector<1x1x8x128xf32> to vector<8x128xf32>
    %384 = vector.shape_cast %381 : vector<8x128xf32> to vector<1x1x8x128xf32>
    tpu.vector_store %arg3[%c2_210, %c0_211, %c0_212, %c0_213], %384 {strides = array<i32>} : memref<6x1x8x128xf32, #tpu.memory_space<vmem>>, vector<1x1x8x128xf32>,
    %c13 = arith.constant 13 : index
    %c10_214 = arith.constant 10 : index
    %385 = memref.load %arg1[%c13, %c10_214] : memref<16x11xf32, #tpu.memory_space<smem>>
    %386 = vector.broadcast %385 : f32 to vector<8x128xf32>
    %c13_215 = arith.constant 13 : index
    %c0_216 = arith.constant 0 : index
    %387 = memref.load %arg1[%c13_215, %c0_216] : memref<16x11xf32, #tpu.memory_space<smem>>
    %388 = vector.broadcast %387 : f32 to vector<8x128xf32>
    %389 = arith.mulf %388, %33 : vector<8x128xf32>
    %390 = arith.addf %386, %389 : vector<8x128xf32>
    %c13_217 = arith.constant 13 : index
    %c1_218 = arith.constant 1 : index
    %391 = memref.load %arg1[%c13_217, %c1_218] : memref<16x11xf32, #tpu.memory_space<smem>>
    %392 = vector.broadcast %391 : f32 to vector<8x128xf32>
    %393 = arith.mulf %392, %57 : vector<8x128xf32>
    %394 = arith.addf %390, %393 : vector<8x128xf32>
    %c13_219 = arith.constant 13 : index
    %c2_220 = arith.constant 2 : index
    %395 = memref.load %arg1[%c13_219, %c2_220] : memref<16x11xf32, #tpu.memory_space<smem>>
    %396 = vector.broadcast %395 : f32 to vector<8x128xf32>
    %397 = arith.mulf %396, %81 : vector<8x128xf32>
    %398 = arith.addf %394, %397 : vector<8x128xf32>
    %c13_221 = arith.constant 13 : index
    %c3_222 = arith.constant 3 : index
    %399 = memref.load %arg1[%c13_221, %c3_222] : memref<16x11xf32, #tpu.memory_space<smem>>
    %400 = vector.broadcast %399 : f32 to vector<8x128xf32>
    %401 = arith.mulf %400, %105 : vector<8x128xf32>
    %402 = arith.addf %398, %401 : vector<8x128xf32>
    %c13_223 = arith.constant 13 : index
    %c4_224 = arith.constant 4 : index
    %403 = memref.load %arg1[%c13_223, %c4_224] : memref<16x11xf32, #tpu.memory_space<smem>>
    %404 = vector.broadcast %403 : f32 to vector<8x128xf32>
    %405 = arith.mulf %404, %129 : vector<8x128xf32>
    %406 = arith.addf %402, %405 : vector<8x128xf32>
    %c13_225 = arith.constant 13 : index
    %c5_226 = arith.constant 5 : index
    %407 = memref.load %arg1[%c13_225, %c5_226] : memref<16x11xf32, #tpu.memory_space<smem>>
    %408 = vector.broadcast %407 : f32 to vector<8x128xf32>
    %409 = arith.mulf %408, %153 : vector<8x128xf32>
    %410 = arith.addf %406, %409 : vector<8x128xf32>
    %c13_227 = arith.constant 13 : index
    %c6_228 = arith.constant 6 : index
    %411 = memref.load %arg1[%c13_227, %c6_228] : memref<16x11xf32, #tpu.memory_space<smem>>
    %412 = vector.broadcast %411 : f32 to vector<8x128xf32>
    %413 = arith.mulf %412, %177 : vector<8x128xf32>
    %414 = arith.addf %410, %413 : vector<8x128xf32>
    %c13_229 = arith.constant 13 : index
    %c7_230 = arith.constant 7 : index
    %415 = memref.load %arg1[%c13_229, %c7_230] : memref<16x11xf32, #tpu.memory_space<smem>>
    %416 = vector.broadcast %415 : f32 to vector<8x128xf32>
    %417 = arith.mulf %416, %201 : vector<8x128xf32>
    %418 = arith.addf %414, %417 : vector<8x128xf32>
    %c13_231 = arith.constant 13 : index
    %c8_232 = arith.constant 8 : index
    %419 = memref.load %arg1[%c13_231, %c8_232] : memref<16x11xf32, #tpu.memory_space<smem>>
    %420 = vector.broadcast %419 : f32 to vector<8x128xf32>
    %421 = arith.mulf %420, %225 : vector<8x128xf32>
    %422 = arith.addf %418, %421 : vector<8x128xf32>
    %c13_233 = arith.constant 13 : index
    %c9_234 = arith.constant 9 : index
    %423 = memref.load %arg1[%c13_233, %c9_234] : memref<16x11xf32, #tpu.memory_space<smem>>
    %424 = vector.broadcast %423 : f32 to vector<8x128xf32>
    %425 = arith.mulf %424, %249 : vector<8x128xf32>
    %426 = arith.addf %422, %425 : vector<8x128xf32>
    %c3_235 = arith.constant 3 : index
    %c0_236 = arith.constant 0 : index
    %c0_237 = arith.constant 0 : index
    %c0_238 = arith.constant 0 : index
    %427 = vector.load %arg3[%c3_235, %c0_236, %c0_237, %c0_238] : memref<6x1x8x128xf32, #tpu.memory_space<vmem>>, vector<1x1x8x128xf32>
    %428 = vector.shape_cast %427 : vector<1x1x8x128xf32> to vector<8x128xf32>
    %429 = vector.shape_cast %426 : vector<8x128xf32> to vector<1x1x8x128xf32>
    tpu.vector_store %arg3[%c3_235, %c0_236, %c0_237, %c0_238], %429 {strides = array<i32>} : memref<6x1x8x128xf32, #tpu.memory_space<vmem>>, vector<1x1x8x128xf32>,
    %c14 = arith.constant 14 : index
    %c10_239 = arith.constant 10 : index
    %430 = memref.load %arg1[%c14, %c10_239] : memref<16x11xf32, #tpu.memory_space<smem>>
    %431 = vector.broadcast %430 : f32 to vector<8x128xf32>
    %c14_240 = arith.constant 14 : index
    %c0_241 = arith.constant 0 : index
    %432 = memref.load %arg1[%c14_240, %c0_241] : memref<16x11xf32, #tpu.memory_space<smem>>
    %433 = vector.broadcast %432 : f32 to vector<8x128xf32>
    %434 = arith.mulf %433, %33 : vector<8x128xf32>
    %435 = arith.addf %431, %434 : vector<8x128xf32>
    %c14_242 = arith.constant 14 : index
    %c1_243 = arith.constant 1 : index
    %436 = memref.load %arg1[%c14_242, %c1_243] : memref<16x11xf32, #tpu.memory_space<smem>>
    %437 = vector.broadcast %436 : f32 to vector<8x128xf32>
    %438 = arith.mulf %437, %57 : vector<8x128xf32>
    %439 = arith.addf %435, %438 : vector<8x128xf32>
    %c14_244 = arith.constant 14 : index
    %c2_245 = arith.constant 2 : index
    %440 = memref.load %arg1[%c14_244, %c2_245] : memref<16x11xf32, #tpu.memory_space<smem>>
    %441 = vector.broadcast %440 : f32 to vector<8x128xf32>
    %442 = arith.mulf %441, %81 : vector<8x128xf32>
    %443 = arith.addf %439, %442 : vector<8x128xf32>
    %c14_246 = arith.constant 14 : index
    %c3_247 = arith.constant 3 : index
    %444 = memref.load %arg1[%c14_246, %c3_247] : memref<16x11xf32, #tpu.memory_space<smem>>
    %445 = vector.broadcast %444 : f32 to vector<8x128xf32>
    %446 = arith.mulf %445, %105 : vector<8x128xf32>
    %447 = arith.addf %443, %446 : vector<8x128xf32>
    %c14_248 = arith.constant 14 : index
    %c4_249 = arith.constant 4 : index
    %448 = memref.load %arg1[%c14_248, %c4_249] : memref<16x11xf32, #tpu.memory_space<smem>>
    %449 = vector.broadcast %448 : f32 to vector<8x128xf32>
    %450 = arith.mulf %449, %129 : vector<8x128xf32>
    %451 = arith.addf %447, %450 : vector<8x128xf32>
    %c14_250 = arith.constant 14 : index
    %c5_251 = arith.constant 5 : index
    %452 = memref.load %arg1[%c14_250, %c5_251] : memref<16x11xf32, #tpu.memory_space<smem>>
    %453 = vector.broadcast %452 : f32 to vector<8x128xf32>
    %454 = arith.mulf %453, %153 : vector<8x128xf32>
    %455 = arith.addf %451, %454 : vector<8x128xf32>
    %c14_252 = arith.constant 14 : index
    %c6_253 = arith.constant 6 : index
    %456 = memref.load %arg1[%c14_252, %c6_253] : memref<16x11xf32, #tpu.memory_space<smem>>
    %457 = vector.broadcast %456 : f32 to vector<8x128xf32>
    %458 = arith.mulf %457, %177 : vector<8x128xf32>
    %459 = arith.addf %455, %458 : vector<8x128xf32>
    %c14_254 = arith.constant 14 : index
    %c7_255 = arith.constant 7 : index
    %460 = memref.load %arg1[%c14_254, %c7_255] : memref<16x11xf32, #tpu.memory_space<smem>>
    %461 = vector.broadcast %460 : f32 to vector<8x128xf32>
    %462 = arith.mulf %461, %201 : vector<8x128xf32>
    %463 = arith.addf %459, %462 : vector<8x128xf32>
    %c14_256 = arith.constant 14 : index
    %c8_257 = arith.constant 8 : index
    %464 = memref.load %arg1[%c14_256, %c8_257] : memref<16x11xf32, #tpu.memory_space<smem>>
    %465 = vector.broadcast %464 : f32 to vector<8x128xf32>
    %466 = arith.mulf %465, %225 : vector<8x128xf32>
    %467 = arith.addf %463, %466 : vector<8x128xf32>
    %c14_258 = arith.constant 14 : index
    %c9_259 = arith.constant 9 : index
    %468 = memref.load %arg1[%c14_258, %c9_259] : memref<16x11xf32, #tpu.memory_space<smem>>
    %469 = vector.broadcast %468 : f32 to vector<8x128xf32>
    %470 = arith.mulf %469, %249 : vector<8x128xf32>
    %471 = arith.addf %467, %470 : vector<8x128xf32>
    %c4_260 = arith.constant 4 : index
    %c0_261 = arith.constant 0 : index
    %c0_262 = arith.constant 0 : index
    %c0_263 = arith.constant 0 : index
    %472 = vector.load %arg3[%c4_260, %c0_261, %c0_262, %c0_263] : memref<6x1x8x128xf32, #tpu.memory_space<vmem>>, vector<1x1x8x128xf32>
    %473 = vector.shape_cast %472 : vector<1x1x8x128xf32> to vector<8x128xf32>
    %474 = vector.shape_cast %471 : vector<8x128xf32> to vector<1x1x8x128xf32>
    tpu.vector_store %arg3[%c4_260, %c0_261, %c0_262, %c0_263], %474 {strides = array<i32>} : memref<6x1x8x128xf32, #tpu.memory_space<vmem>>, vector<1x1x8x128xf32>,
    %c15 = arith.constant 15 : index
    %c10_264 = arith.constant 10 : index
    %475 = memref.load %arg1[%c15, %c10_264] : memref<16x11xf32, #tpu.memory_space<smem>>
    %476 = vector.broadcast %475 : f32 to vector<8x128xf32>
    %c15_265 = arith.constant 15 : index
    %c0_266 = arith.constant 0 : index
    %477 = memref.load %arg1[%c15_265, %c0_266] : memref<16x11xf32, #tpu.memory_space<smem>>
    %478 = vector.broadcast %477 : f32 to vector<8x128xf32>
    %479 = arith.mulf %478, %33 : vector<8x128xf32>
    %480 = arith.addf %476, %479 : vector<8x128xf32>
    %c15_267 = arith.constant 15 : index
    %c1_268 = arith.constant 1 : index
    %481 = memref.load %arg1[%c15_267, %c1_268] : memref<16x11xf32, #tpu.memory_space<smem>>
    %482 = vector.broadcast %481 : f32 to vector<8x128xf32>
    %483 = arith.mulf %482, %57 : vector<8x128xf32>
    %484 = arith.addf %480, %483 : vector<8x128xf32>
    %c15_269 = arith.constant 15 : index
    %c2_270 = arith.constant 2 : index
    %485 = memref.load %arg1[%c15_269, %c2_270] : memref<16x11xf32, #tpu.memory_space<smem>>
    %486 = vector.broadcast %485 : f32 to vector<8x128xf32>
    %487 = arith.mulf %486, %81 : vector<8x128xf32>
    %488 = arith.addf %484, %487 : vector<8x128xf32>
    %c15_271 = arith.constant 15 : index
    %c3_272 = arith.constant 3 : index
    %489 = memref.load %arg1[%c15_271, %c3_272] : memref<16x11xf32, #tpu.memory_space<smem>>
    %490 = vector.broadcast %489 : f32 to vector<8x128xf32>
    %491 = arith.mulf %490, %105 : vector<8x128xf32>
    %492 = arith.addf %488, %491 : vector<8x128xf32>
    %c15_273 = arith.constant 15 : index
    %c4_274 = arith.constant 4 : index
    %493 = memref.load %arg1[%c15_273, %c4_274] : memref<16x11xf32, #tpu.memory_space<smem>>
    %494 = vector.broadcast %493 : f32 to vector<8x128xf32>
    %495 = arith.mulf %494, %129 : vector<8x128xf32>
    %496 = arith.addf %492, %495 : vector<8x128xf32>
    %c15_275 = arith.constant 15 : index
    %c5_276 = arith.constant 5 : index
    %497 = memref.load %arg1[%c15_275, %c5_276] : memref<16x11xf32, #tpu.memory_space<smem>>
    %498 = vector.broadcast %497 : f32 to vector<8x128xf32>
    %499 = arith.mulf %498, %153 : vector<8x128xf32>
    %500 = arith.addf %496, %499 : vector<8x128xf32>
    %c15_277 = arith.constant 15 : index
    %c6_278 = arith.constant 6 : index
    %501 = memref.load %arg1[%c15_277, %c6_278] : memref<16x11xf32, #tpu.memory_space<smem>>
    %502 = vector.broadcast %501 : f32 to vector<8x128xf32>
    %503 = arith.mulf %502, %177 : vector<8x128xf32>
    %504 = arith.addf %500, %503 : vector<8x128xf32>
    %c15_279 = arith.constant 15 : index
    %c7_280 = arith.constant 7 : index
    %505 = memref.load %arg1[%c15_279, %c7_280] : memref<16x11xf32, #tpu.memory_space<smem>>
    %506 = vector.broadcast %505 : f32 to vector<8x128xf32>
    %507 = arith.mulf %506, %201 : vector<8x128xf32>
    %508 = arith.addf %504, %507 : vector<8x128xf32>
    %c15_281 = arith.constant 15 : index
    %c8_282 = arith.constant 8 : index
    %509 = memref.load %arg1[%c15_281, %c8_282] : memref<16x11xf32, #tpu.memory_space<smem>>
    %510 = vector.broadcast %509 : f32 to vector<8x128xf32>
    %511 = arith.mulf %510, %225 : vector<8x128xf32>
    %512 = arith.addf %508, %511 : vector<8x128xf32>
    %c15_283 = arith.constant 15 : index
    %c9_284 = arith.constant 9 : index
    %513 = memref.load %arg1[%c15_283, %c9_284] : memref<16x11xf32, #tpu.memory_space<smem>>
    %514 = vector.broadcast %513 : f32 to vector<8x128xf32>
    %515 = arith.mulf %514, %249 : vector<8x128xf32>
    %516 = arith.addf %512, %515 : vector<8x128xf32>
    %c5_285 = arith.constant 5 : index
    %c0_286 = arith.constant 0 : index
    %c0_287 = arith.constant 0 : index
    %c0_288 = arith.constant 0 : index
    %517 = vector.load %arg3[%c5_285, %c0_286, %c0_287, %c0_288] : memref<6x1x8x128xf32, #tpu.memory_space<vmem>>, vector<1x1x8x128xf32>
    %518 = vector.shape_cast %517 : vector<1x1x8x128xf32> to vector<8x128xf32>
    %519 = vector.shape_cast %516 : vector<8x128xf32> to vector<1x1x8x128xf32>
    tpu.vector_store %arg3[%c5_285, %c0_286, %c0_287, %c0_288], %519 {strides = array<i32>} : memref<6x1x8x128xf32, #tpu.memory_space<vmem>>, vector<1x1x8x128xf32>,
    return
  }
  func.func @transform_0(%arg0: i32) -> (i32, i32) {
    %c0_i32 = arith.constant 0 : i32
    %c0_i32_0 = arith.constant 0 : i32
    %c0_i32_1 = arith.constant 0 : i32
    return %c0_i32, %c0_i32_0 : i32, i32
  }
  func.func @transform_1(%arg0: i32) -> (i32, i32, i32, i32) {
    %c0_i32 = arith.constant 0 : i32
    %c0_i32_0 = arith.constant 0 : i32
    %c0_i32_1 = arith.constant 0 : i32
    %c0_i32_2 = arith.constant 0 : i32
    return %c0_i32, %arg0, %c0_i32_0, %c0_i32_1 : i32, i32, i32, i32
  }
  func.func @transform_2(%arg0: i32) -> (i32, i32, i32, i32) {
    %c0_i32 = arith.constant 0 : i32
    %c0_i32_0 = arith.constant 0 : i32
    %c0_i32_1 = arith.constant 0 : i32
    %c0_i32_2 = arith.constant 0 : i32
    return %c0_i32, %arg0, %c0_i32_0, %c0_i32_1 : i32, i32, i32, i32
  }
}

</mosaic_0001>

<bundles_post_ra>
// kernel: onecoin_net_forward_fm.1
= control target key start
LH: loop header
LB: loop body
LE: loop exit
PB: predicated region body
PF: predicated region fallthrough
CT: control target
= control target key end

     0   :  { %7 = vsyncpa [#allocation3], 0  ;;  %s1238_s0 = inlined_call_operand.vmem [shape: f32[16,11], index: 0, kind: input, shape index: {}]   ;;  %s1239_s1 = inlined_call_operand.vmem [shape: f32[5,1,8,128], index: 1, kind: input, shape index: {}]   ;;  %s1240_s2 = inlined_call_operand.vmem [shape: f32[6,1,8,128], index: 2, kind: output, shape index: {}]  }
   0x1   :  { %s13_s11 = sshll.u32 %s1238_s0, 4  ;;  %s14_s11 = int_to_ptr.vmem [resolvable:$true] %s13_s11 }
   0x2   :  { %s670_s12 = scalar_lea.vmem %s14_s11, 256  ;;  %p675_p1 = scmp.lt.s32.totalorder %s14_s11, %s14_s11 }
   0x3   :  { %p671_p0 = scmp.ne.s32.totalorder %s14_s11, %s670_s12  ;;  %p676_p2 = scmp.lt.s32.totalorder %s670_s12, %s670_s12 }
   0x5   :  { %p677_p3 = por %p676_p2, %p675_p1 }
   0x7   :  { %p678_p4 = pnand %p677_p3, %p671_p0 }
   0x9   :  { %681 = shalt.err (!%p678_p4)
}
   0xa   :  { %s684_s13 = smov [#allocation2]   ;;  %s685_s14 = smov 128  }
   0xb   :  { %s686_s15 = smov 8  }
   0xc   :  { %19 = dma.vmem_to_smem %s14_s11, 256, %s684_s13, [#allocation3], %s685_s14, %s685_s14, %s686_s15  }
   0xd   :  { %682 = dma.done.wait [#allocation3], 256  }
   0xe   :  { %683 = vsyncadd [#allocation3], 4294967040 }
   0xf   :  { %25 = sfence }
  0x10   :  { %s705_s16 = sld [smem:[#allocation2 + $0xa]]  ;;  %s37_s17 = sld [smem:[#allocation2]]  ;;  %v718_v0 = vld [vmem:[%s1239_s1] sm:$0xff]  ;;  %v723_v1 = vld [vmem:[%s1239_s1 + $0x8] sm:$0xff]  ;;  %v732_v2 = vld [vmem:[%s1239_s1 + $0x10] sm:$0xff] }
  0x11   :  { %s538_s0 = sld [smem:[#allocation2 + $0x1]]  ;;  %s539_s18 = sld [smem:[#allocation2 + $0x2]]  ;;  %v737_v3 = vld [vmem:[%s1239_s1 + $0x18] sm:$0xff]  ;;  %v757_v11 = vld [vmem:[%s1239_s1 + $0x20] sm:$0xff] }
  0x12   :  { %s540_s19 = sld [smem:[#allocation2 + $0x3]]  ;;  %s707_s20 = sld [smem:[#allocation2 + $0x4]] }
  0x13   :  { %s709_s21 = sld [smem:[#allocation2 + $0x8a]]  ;;  %s711_s22 = sld [smem:[#allocation2 + $0x80]] }
  0x14   :  { %s713_s23 = sld [smem:[#allocation2 + $0x81]]  ;;  %s725_s28 = sld [smem:[#allocation2 + $0x82]] }
  0x15   :  { %s727_s29 = sld [smem:[#allocation2 + $0x83]]  ;;  %s739_s6 = sld [smem:[#allocation2 + $0x84]] }
  0x16   :  { %s741_s7 = sld [smem:[#allocation2 + $0x10a]]  ;;  %v36_v4 = vstv %s705_s16  ;;  %v38_v5 = vstv %s37_s17  ;;  %s744_s8 = sld [smem:[#allocation2 + $0x100]] }
  0x17   :  { %v42_v6 = vstv %s538_s0  ;;  %s746_s9 = sld [smem:[#allocation2 + $0x101]]  ;;  %v39_v7 = vmul.f32 %v38_v5, %v718_v0  ;;  %v46_v9 = vstv %s539_s18  ;;  %s750_s10 = sld [smem:[#allocation2 + $0x102]] }
  0x18   :  { %v43_v8 = vmul.f32 %v723_v1, %v42_v6  ;;  %v50_v10 = vstv %s540_s19  ;;  %s752_s11 = sld [smem:[#allocation2 + $0x103]]  ;;  %v47_v12 = vmul.f32 %v732_v2, %v46_v9  ;;  %v54_v14 = vstv %s707_s20  ;;  %s762_s14 = sld [smem:[#allocation2 + $0x104]] }
  0x19   :  { %v51_v13 = vmul.f32 %v737_v3, %v50_v10  ;;  %s764_s15 = sld [smem:[#allocation2 + $0x18a]]  ;;  %v40_v15 = vadd.f32 %v39_v7, %v36_v4  ;;  %v59_v16 = vstv %s709_s21  ;;  %v61_v17 = vstv %s711_s22  ;;  %s769_s16 = sld [smem:[#allocation2 + $0x180]] }
  0x1a   :  { %v65_v18 = vstv %s713_s23  ;;  %s771_s1 = sld [smem:[#allocation2 + $0x181]]  ;;  %v62_v19 = vmul.f32 %v61_v17, %v718_v0  ;;  %v69_v21 = vstv %s725_s28  ;;  %s777_s17 = sld [smem:[#allocation2 + $0x182]]  ;;  %v55_v24 = vmul.f32 %v757_v11, %v54_v14 }
  0x1b   :  { %v66_v20 = vmul.f32 %v723_v1, %v65_v18  ;;  %v73_v22 = vstv %s727_s29  ;;  %s779_s0 = sld [smem:[#allocation2 + $0x183]]  ;;  %v44_v23 = vadd.f32 %v43_v8, %v40_v15  ;;  %v70_v25 = vmul.f32 %v732_v2, %v69_v21  ;;  %s787_s18 = sld [smem:[#allocation2 + $0x184]] }
  0x1c   :  { %v77_v26 = vstv %s739_s6  ;;  %v63_v27 = vadd.f32 %v62_v19, %v59_v16  ;;  %v74_v28 = vmul.f32 %v737_v3, %v73_v22  ;;  %v82_v29 = vstv %s741_s7  ;;  %s792_s19 = sld [smem:[#allocation2 + $0x20a]]  ;;  %s794_s20 = sld [smem:[#allocation2 + $0x200]] }
  0x1d   :  { %v84_v30 = vstv %s744_s8  ;;  %v48_v31 = vadd.f32 %v47_v12, %v44_v23  ;;  %v88_v33 = vstv %s746_s9  ;;  %v92_v34 = vstv %s750_s10  ;;  %s799_s21 = sld [smem:[#allocation2 + $0x201]]  ;;  %s801_s22 = sld [smem:[#allocation2 + $0x202]] }
  0x1e   :  { %v85_v32 = vmul.f32 %v84_v30, %v718_v0  ;;  %v67_v35 = vadd.f32 %v66_v20, %v63_v27  ;;  %v78_v36 = vmul.f32 %v757_v11, %v77_v26  ;;  %v89_v37 = vmul.f32 %v723_v1, %v88_v33  ;;  %s808_s23 = sld [smem:[#allocation2 + $0x203]]  ;;  %s810_s24 = sld [smem:[#allocation2 + $0x204]] }
  0x1f   :  { %v96_v38 = vstv %s752_s11  ;;  %v52_v39 = vadd.f32 %v51_v13, %v48_v31  ;;  %v93_v41 = vmul.f32 %v732_v2, %v92_v34  ;;  %v100_v44 = vstv %s762_s14  ;;  %s814_s25 = sld [smem:[#allocation2 + $0x28a]]  ;;  %s816_s26 = sld [smem:[#allocation2 + $0x280]] }
  0x20   :  { %v86_v40 = vadd.f32 %v85_v32, %v82_v29  ;;  %v97_v42 = vmul.f32 %v737_v3, %v96_v38  ;;  %v71_v43 = vadd.f32 %v70_v25, %v67_v35  ;;  %v105_v45 = vstv %s764_s15  ;;  %s821_s27 = sld [smem:[#allocation2 + $0x281]]  ;;  %s823_s28 = sld [smem:[#allocation2 + $0x282]] }
  0x21   :  { %v107_v46 = vstv %s769_s16  ;;  %v56_v47 = vadd.f32 %v55_v24, %v52_v39  ;;  %v111_v50 = vstv %s771_s1  ;;  %v115_v53 = vstv %s777_s17  ;;  %s829_s29 = sld [smem:[#allocation2 + $0x283]]  ;;  %s831_s30 = sld [smem:[#allocation2 + $0x284]] }
  0x22   :  { %v90_v48 = vadd.f32 %v89_v37, %v86_v40  ;;  %v108_v49 = vmul.f32 %v107_v46, %v718_v0  ;;  %v75_v51 = vadd.f32 %v74_v28, %v71_v43  ;;  %v112_v52 = vmul.f32 %v723_v1, %v111_v50  ;;  %s835_s3 = sld [smem:[#allocation2 + $0x30a]]  ;;  %s837_s4 = sld [smem:[#allocation2 + $0x300]] }
  0x23   :  { %v119_v54 = vstv %s779_s0  ;;  %v101_v56 = vmul.f32 %v757_v11, %v100_v44  ;;  %v116_v58 = vmul.f32 %v732_v2, %v115_v53  ;;  %v123_v61 = vstv %s787_s18  ;;  %s844_s5 = sld [smem:[#allocation2 + $0x301]]  ;;  %s846_s6 = sld [smem:[#allocation2 + $0x302]] }
  0x24   :  { %v94_v55 = vadd.f32 %v93_v41, %v90_v48  ;;  %v109_v57 = vadd.f32 %v108_v49, %v105_v45  ;;  %v79_v59 = vadd.f32 %v78_v36, %v75_v51  ;;  %v120_v60 = vmul.f32 %v737_v3, %v119_v54  ;;  %s854_s7 = sld [smem:[#allocation2 + $0x303]]  ;;  %s856_s8 = sld [smem:[#allocation2 + $0x304]] }
  0x25   :  { %v128_v4 = vstv %s792_s19  ;;  %v130_v5 = vstv %s794_s20  ;;  %v839_v6 = vmax.f32 %v56_v47, 0.0  ;;  %v134_v8 = vstv %s799_s21  ;;  %s861_s9 = sld [smem:[#allocation2 + $0x38a]]  ;;  %s863_s10 = sld [smem:[#allocation2 + $0x380]] }
  0x26   :  { %v98_v62 = vadd.f32 %v97_v42, %v94_v55  ;;  %v113_v63 = vadd.f32 %v112_v52, %v109_v57  ;;  %v131_v7 = vmul.f32 %v130_v5, %v718_v0  ;;  %v138_v9 = vstv %s801_s22  ;;  %s868_s11 = sld [smem:[#allocation2 + $0x381]]  ;;  %s870_s12 = sld [smem:[#allocation2 + $0x382]] }
  0x27   :  { %v124_v13 = vmul.f32 %v757_v11, %v123_v61  ;;  %v135_v14 = vmul.f32 %v723_v1, %v134_v8  ;;  %v850_v15 = vmax.f32 %v79_v59, 0.0  ;;  %v139_v17 = vmul.f32 %v732_v2, %v138_v9  ;;  %s879_s13 = sld [smem:[#allocation2 + $0x383]]  ;;  %s881_s14 = sld [smem:[#allocation2 + $0x384]] }
  0x28   :  { %v102_v10 = vadd.f32 %v101_v56, %v98_v62  ;;  %v117_v12 = vadd.f32 %v116_v58, %v113_v63  ;;  %v132_v16 = vadd.f32 %v131_v7, %v128_v4  ;;  %v142_v18 = vstv %s808_s23  ;;  %s887_s15 = sld [smem:[#allocation2 + $0x40a]]  ;;  %s889_s16 = sld [smem:[#allocation2 + $0x400]] }
  0x29   :  { %v143_v20 = vmul.f32 %v737_v3, %v142_v18  ;;  %v146_v21 = vstv %s810_s24  ;;  %v151_v22 = vstv %s814_s25  ;;  %v153_v24 = vstv %s816_s26  ;;  %s894_s1 = sld [smem:[#allocation2 + $0x401]]  ;;  %s896_s17 = sld [smem:[#allocation2 + $0x402]] }
  0x2a   :  { %v121_v19 = vadd.f32 %v120_v60, %v117_v12  ;;  %v136_v23 = vadd.f32 %v135_v14, %v132_v16  ;;  %v157_v25 = vstv %s821_s27  ;;  %v161_v26 = vstv %s823_s28  ;;  %s904_s0 = sld [smem:[#allocation2 + $0x403]]  ;;  %s908_s18 = sld [smem:[#allocation2 + $0x404]] }
  0x2b   :  { %v872_v27 = vmax.f32 %v102_v10, 0.0  ;;  %v154_v29 = vmul.f32 %v153_v24, %v718_v0  ;;  %v158_v30 = vmul.f32 %v723_v1, %v157_v25  ;;  %v147_v32 = vmul.f32 %v757_v11, %v146_v21  ;;  %s910_s19 = sld [smem:[#allocation2 + $0x48a]]  ;;  %s916_s20 = sld [smem:[#allocation2 + $0x480]] }
  0x2c   :  { %v125_v28 = vadd.f32 %v124_v13, %v121_v19  ;;  %v140_v31 = vadd.f32 %v139_v17, %v136_v23  ;;  %v162_v33 = vmul.f32 %v732_v2, %v161_v26  ;;  %v165_v34 = vstv %s829_s29  ;;  %s918_s21 = sld [smem:[#allocation2 + $0x481]]  ;;  %s922_s22 = sld [smem:[#allocation2 + $0x482]] }
  0x2d   :  { %v155_v36 = vadd.f32 %v154_v29, %v151_v22  ;;  %v169_v37 = vstv %s831_s30  ;;  %v174_v38 = vstv %s835_s3  ;;  %v176_v40 = vstv %s837_s4  ;;  %s929_s23 = sld [smem:[#allocation2 + $0x483]]  ;;  %s931_s24 = sld [smem:[#allocation2 + $0x484]] }
  0x2e   :  { %v883_v35 = vmax.f32 %v125_v28, 0.0  ;;  %v144_v39 = vadd.f32 %v143_v20, %v140_v31  ;;  %v180_v41 = vstv %s844_s5  ;;  %v184_v42 = vstv %s846_s6  ;;  %s938_s25 = sld [smem:[#allocation2 + $0x50a]]  ;;  %s940_s26 = sld [smem:[#allocation2 + $0x500]] }
  0x2f   :  { %v159_v43 = vadd.f32 %v158_v30, %v155_v36  ;;  %v166_v44 = vmul.f32 %v737_v3, %v165_v34  ;;  %v177_v45 = vmul.f32 %v176_v40, %v718_v0  ;;  %v181_v46 = vmul.f32 %v723_v1, %v180_v41  ;;  %s944_s27 = sld [smem:[#allocation2 + $0x501]]  ;;  %s946_s28 = sld [smem:[#allocation2 + $0x502]] }
  0x30   :  { %v148_v47 = vadd.f32 %v147_v32, %v144_v39  ;;  %v170_v48 = vmul.f32 %v757_v11, %v169_v37  ;;  %v185_v49 = vmul.f32 %v732_v2, %v184_v42  ;;  %v188_v50 = vstv %s854_s7  ;;  %s953_s29 = sld [smem:[#allocation2 + $0x503]]  ;;  %s955_s30 = sld [smem:[#allocation2 + $0x504]] }
  0x31   :  { %v163_v51 = vadd.f32 %v162_v33, %v159_v43  ;;  %v178_v52 = vadd.f32 %v177_v45, %v174_v38  ;;  %v192_v53 = vstv %s856_s8  ;;  %v197_v54 = vstv %s861_s9  ;;  %s962_s3 = sld [smem:[#allocation2 + $0x505]]  ;;  %s966_s4 = sld [smem:[#allocation2 + $0x506]] }
  0x32   :  { %v189_v55 = vmul.f32 %v737_v3, %v188_v50  ;;  %v199_v56 = vstv %s863_s10  ;;  %v203_v57 = vstv %s868_s11  ;;  %v207_v58 = vstv %s870_s12  ;;  %s972_s5 = sld [smem:[#allocation2 + $0x507]]  ;;  %s974_s6 = sld [smem:[#allocation2 + $0x508]] }
  0x33   :  { %v167_v59 = vadd.f32 %v166_v44, %v163_v51  ;;  %v182_v60 = vadd.f32 %v181_v46, %v178_v52  ;;  %v200_v61 = vmul.f32 %v199_v56, %v718_v0  ;;  %v204_v62 = vmul.f32 %v723_v1, %v203_v57  ;;  %s978_s7 = sld [smem:[#allocation2 + $0x509]]  ;;  %s980_s8 = sld [smem:[#allocation2 + $0x58a]] }
  0x34   :  { %v924_v63 = vmax.f32 %v148_v47, 0.0  ;;  %v193_v4 = vmul.f32 %v757_v11, %v192_v53  ;;  %v208_v5 = vmul.f32 %v732_v2, %v207_v58  ;;  %v211_v7 = vstv %s879_s13  ;;  %s985_s9 = sld [smem:[#allocation2 + $0x580]]  ;;  %s987_s10 = sld [smem:[#allocation2 + $0x581]] }
  0x35   :  { %v171_v8 = vadd.f32 %v170_v48, %v167_v59  ;;  %v186_v9 = vadd.f32 %v185_v49, %v182_v60  ;;  %v201_v10 = vadd.f32 %v200_v61, %v197_v54  ;;  %v215_v12 = vstv %s881_s14  ;;  %s991_s11 = sld [smem:[#allocation2 + $0x582]]  ;;  %s997_s12 = sld [smem:[#allocation2 + $0x583]] }
  0x36   :  { %v220_v13 = vstv %s887_s15  ;;  %v222_v14 = vstv %s889_s16  ;;  %v226_v16 = vstv %s894_s1  ;;  %v230_v17 = vstv %s896_s17  ;;  %s999_s13 = sld [smem:[#allocation2 + $0x584]]  ;;  %s1002_s14 = sld [smem:[#allocation2 + $0x585]] }
  0x37   :  { %v190_v18 = vadd.f32 %v189_v55, %v186_v9  ;;  %v205_v19 = vadd.f32 %v204_v62, %v201_v10  ;;  %v212_v20 = vmul.f32 %v737_v3, %v211_v7  ;;  %v223_v21 = vmul.f32 %v222_v14, %v718_v0  ;;  %s1008_s15 = sld [smem:[#allocation2 + $0x586]]  ;;  %s1013_s16 = sld [smem:[#allocation2 + $0x587]] }
  0x38   :  { %v948_v22 = vmax.f32 %v171_v8, 0.0  ;;  %v216_v23 = vmul.f32 %v757_v11, %v215_v12  ;;  %v227_v24 = vmul.f32 %v723_v1, %v226_v16  ;;  %v234_v25 = vstv %s904_s0  ;;  %s1015_s1 = sld [smem:[#allocation2 + $0x588]]  ;;  %s1022_s17 = sld [smem:[#allocation2 + $0x589]] }
  0x39   :  { %v209_v26 = vadd.f32 %v208_v5, %v205_v19  ;;  %v224_v28 = vadd.f32 %v223_v21, %v220_v13  ;;  %v231_v29 = vmul.f32 %v732_v2, %v230_v17  ;;  %v238_v30 = vstv %s908_s18  ;;  %s1024_s0 = sld [smem:[#allocation2 + $0x60a]]  ;;  %s1028_s18 = sld [smem:[#allocation2 + $0x600]] }
  0x3a   :  { %v194_v31 = vadd.f32 %v193_v4, %v190_v18  ;;  %v243_v32 = vstv %s910_s19  ;;  %v245_v33 = vstv %s916_s20  ;;  %v249_v34 = vstv %s918_s21  ;;  %s1030_s19 = sld [smem:[#allocation2 + $0x601]]  ;;  %s1036_s20 = sld [smem:[#allocation2 + $0x602]] }
  0x3b   :  { %v213_v36 = vadd.f32 %v212_v20, %v209_v26  ;;  %v228_v37 = vadd.f32 %v227_v24, %v224_v28  ;;  %v235_v38 = vmul.f32 %v737_v3, %v234_v25  ;;  %v246_v39 = vmul.f32 %v245_v33, %v718_v0  ;;  %s1038_s21 = sld [smem:[#allocation2 + $0x603]] }
  0x3c   :  { %v250_v40 = vmul.f32 %v723_v1, %v249_v34  ;;  %v253_v41 = vstv %s922_s22  ;;  %v257_v42 = vstv %s929_s23  ;;  %v261_v43 = vstv %s931_s24  ;;  %s1048_s22 = sld [smem:[#allocation2 + $0x604]]  ;;  %s1052_s23 = sld [smem:[#allocation2 + $0x605]] }
  0x3d   :  { %v232_v44 = vadd.f32 %v231_v29, %v228_v37  ;;  %v239_v45 = vmul.f32 %v757_v11, %v238_v30  ;;  %v247_v46 = vadd.f32 %v246_v39, %v243_v32  ;;  %v254_v0 = vmul.f32 %v732_v2, %v253_v41  ;;  %s1059_s24 = sld [smem:[#allocation2 + $0x606]] }
  0x3e   :  { %v217_v1 = vadd.f32 %v216_v23, %v213_v36  ;;  %v258_v47 = vmul.f32 %v737_v3, %v257_v42  ;;  %v266_v48 = vstv %s938_s25  ;;  %v268_v49 = vstv %s940_s26  ;;  %s1061_s25 = sld [smem:[#allocation2 + $0x607]]  ;;  %s1067_s26 = sld [smem:[#allocation2 + $0x608]] }
  0x3f   :  { %v236_v50 = vadd.f32 %v235_v38, %v232_v44  ;;  %v251_v51 = vadd.f32 %v250_v40, %v247_v46  ;;  %v262_v52 = vmul.f32 %v757_v11, %v261_v43  ;;  %v269_v2 = vmul.f32 %v268_v49, %v839_v6 }
  0x40   :  { %v272_v53 = vstv %s944_s27  ;;  %v276_v54 = vstv %s946_s28  ;;  %v280_v55 = vstv %s953_s29  ;;  %v284_v56 = vstv %s955_s30  ;;  %s1069_s27 = sld [smem:[#allocation2 + $0x609]]  ;;  %s1073_s28 = sld [smem:[#allocation2 + $0x68a]] }
  0x41   :  { %v240_v3 = vadd.f32 %v239_v45, %v236_v50  ;;  %v255_v57 = vadd.f32 %v254_v0, %v251_v51  ;;  %v270_v58 = vadd.f32 %v269_v2, %v266_v48  ;;  %v273_v59 = vmul.f32 %v272_v53, %v850_v15  ;;  %s1075_s29 = sld [smem:[#allocation2 + $0x680]]  ;;  %s1081_s30 = sld [smem:[#allocation2 + $0x681]] }
  0x42   :  { %v1004_v11 = vmax.f32 %v194_v31, 0.0  ;;  %v277_v60 = vmul.f32 %v276_v54, %v872_v27  ;;  %v288_v61 = vstv %s962_s3  ;;  %v1010_v62 = vmax.f32 %v217_v1, 0.0  ;;  %s1083_s3 = sld [smem:[#allocation2 + $0x682]] }
  0x43   :  { %v259_v4 = vadd.f32 %v258_v47, %v255_v57  ;;  %v274_v5 = vadd.f32 %v273_v59, %v270_v58  ;;  %v281_v7 = vmul.f32 %v280_v55, %v883_v35  ;;  %v1017_v8 = vmax.f32 %v240_v3, 0.0 }
  0x44   :  { %v285_v9 = vmul.f32 %v284_v56, %v924_v63  ;;  %v289_v10 = vmul.f32 %v288_v61, %v948_v22  ;;  %v292_v12 = vstv %s966_s4  ;;  %v296_v16 = vstv %s972_s5  ;;  %s1087_s4 = sld [smem:[#allocation2 + $0x683]]  ;;  %s1092_s5 = sld [smem:[#allocation2 + $0x684]] }
  0x45   :  { %v263_v13 = vadd.f32 %v262_v52, %v259_v4  ;;  %v278_v14 = vadd.f32 %v277_v60, %v274_v5  ;;  %v300_v17 = vstv %s974_s6  ;;  %v304_v18 = vstv %s978_s7  ;;  %s1094_s6 = sld [smem:[#allocation2 + $0x685]]  ;;  %s1102_s7 = sld [smem:[#allocation2 + $0x686]] }
  0x46   :  { %v309_v19 = vstv %s980_s8  ;;  %v311_v20 = vstv %s985_s9  ;;  %v315_v21 = vstv %s987_s10  ;;  %v293_v28 = vmul.f32 %v292_v12, %v1004_v11  ;;  %s1104_s8 = sld [smem:[#allocation2 + $0x687]]  ;;  %s1110_s9 = sld [smem:[#allocation2 + $0x688]] }
  0x47   :  { %v1040_v23 = vmax.f32 %v263_v13, 0.0  ;;  %v282_v24 = vadd.f32 %v281_v7, %v278_v14  ;;  %v312_v25 = vmul.f32 %v311_v20, %v839_v6  ;;  %v316_v26 = vmul.f32 %v315_v21, %v850_v15  ;;  %s1112_s10 = sld [smem:[#allocation2 + $0x70a]] }
  0x48   :  { %v319_v29 = vstv %s991_s11  ;;  %v323_v30 = vstv %s997_s12  ;;  %v327_v31 = vstv %s999_s13  ;;  %v331_v36 = vstv %s1002_s14  ;;  %s1119_s13 = sld [smem:[#allocation2 + $0x700]]  ;;  %s1121_s14 = sld [smem:[#allocation2 + $0x701]] }
  0x49   :  { %v286_v32 = vadd.f32 %v285_v9, %v282_v24  ;;  %v313_v33 = vadd.f32 %v312_v25, %v309_v19  ;;  %v320_v34 = vmul.f32 %v319_v29, %v872_v27  ;;  %v297_v37 = vmul.f32 %v296_v16, %v1010_v62 }
  0x4a   :  { %v301_v38 = vmul.f32 %v300_v17, %v1017_v8  ;;  %v305_v39 = vmul.f32 %v304_v18, %v1040_v23  ;;  %v324_v42 = vmul.f32 %v323_v30, %v883_v35  ;;  %v328_v43 = vmul.f32 %v327_v31, %v924_v63 }
  0x4b   :  { %v290_v40 = vadd.f32 %v289_v10, %v286_v32  ;;  %v317_v41 = vadd.f32 %v316_v26, %v313_v33  ;;  %v332_v44 = vmul.f32 %v331_v36, %v948_v22  ;;  %v335_v45 = vstv %s1008_s15  ;;  %s1127_s15 = sld [smem:[#allocation2 + $0x702]] }
  0x4c   :  { %v339_v46 = vstv %s1013_s16  ;;  %v343_v0 = vstv %s1015_s1  ;;  %v347_v48 = vstv %s1022_s17  ;;  %v353_v49 = vstv %s1024_s0  ;;  %s1131_s16 = sld [smem:[#allocation2 + $0x689]]  ;;  %s1133_s1 = sld [smem:[#allocation2 + $0x703]] }
  0x4d   :  { %v294_v1 = vadd.f32 %v293_v28, %v290_v40  ;;  %v321_v47 = vadd.f32 %v320_v34, %v317_v41  ;;  %v355_v50 = vstv %s1028_s18  ;;  %v359_v51 = vstv %s1030_s19  ;;  %s1138_s17 = sld [smem:[#allocation2 + $0x704]]  ;;  %s1142_s0 = sld [smem:[#allocation2 + $0x705]] }
  0x4e   :  { %v363_v52 = vstv %s1036_s20  ;;  %v367_v2 = vstv %s1038_s21  ;;  %v356_v55 = vmul.f32 %v355_v50, %v839_v6  ;;  %v360_v56 = vmul.f32 %v359_v51, %v850_v15  ;;  %s1149_s18 = sld [smem:[#allocation2 + $0x706]]  ;;  %s1151_s19 = sld [smem:[#allocation2 + $0x707]] }
  0x4f   :  { %v298_v53 = vadd.f32 %v297_v37, %v294_v1  ;;  %v325_v54 = vadd.f32 %v324_v42, %v321_v47  ;;  %v336_v3 = vmul.f32 %v335_v45, %v1004_v11  ;;  %v364_v57 = vmul.f32 %v363_v52, %v872_v27  ;;  %s1156_s20 = sld [smem:[#allocation2 + $0x78a]]  ;;  %s1158_s21 = sld [smem:[#allocation2 + $0x780]] }
  0x50   :  { %v371_v58 = vstv %s1048_s22  ;;  %v357_v61 = vadd.f32 %v356_v55, %v353_v49  ;;  %v375_v4 = vstv %s1052_s23  ;;  %v340_v5 = vmul.f32 %v339_v46, %v1010_v62 }
  0x51   :  { %v302_v59 = vadd.f32 %v301_v38, %v298_v53  ;;  %v329_v60 = vadd.f32 %v328_v43, %v325_v54  ;;  %v344_v7 = vmul.f32 %v343_v0, %v1017_v8  ;;  %v348_v9 = vmul.f32 %v347_v48, %v1040_v23 }
  0x52   :  { %v368_v10 = vmul.f32 %v367_v2, %v883_v35  ;;  %v361_v14 = vadd.f32 %v360_v56, %v357_v61  ;;  %v372_v16 = vmul.f32 %v371_v58, %v924_v63  ;;  %v376_v17 = vmul.f32 %v375_v4, %v948_v22 }
  0x53   :  { %v306_v12 = vadd.f32 %v305_v39, %v302_v59  ;;  %v333_v13 = vadd.f32 %v332_v44, %v329_v60  ;;  %v379_v18 = vstv %s1059_s24  ;;  %v383_v19 = vstv %s1061_s25  ;;  %s1166_s24 = sld [smem:[#allocation2 + $0x781]]  ;;  %s1168_s25 = sld [smem:[#allocation2 + $0x782]] }
  0x54   :  { %v387_v20 = vstv %s1067_s26  ;;  %v365_v24 = vadd.f32 %v364_v57, %v361_v14  ;;  %v397_v25 = vstv %s1073_s28  ;;  %v399_v26 = vstv %s1075_s29  ;;  %s1176_s26 = sld [smem:[#allocation2 + $0x783]]  ;;  %s1184_s28 = sld [smem:[#allocation2 + $0x784]] }
  0x55   :  { %307 = vst [vmem:[%s1240_s2] sm:$0xff] %v306_v12  ;;  %v337_v21 = vadd.f32 %v336_v3, %v333_v13  ;;  %v391_v28 = vstv %s1069_s27  ;;  %v400_v29 = vmul.f32 %v399_v26, %v839_v6  ;;  %v403_v30 = vstv %s1081_s30  ;;  %s1182_s27 = sld [smem:[#allocation2 + $0x708]]  ;;  %s1191_s29 = sld [smem:[#allocation2 + $0x709]] }
  0x56   :  { %v407_v31 = vstv %s1083_s3  ;;  %v369_v33 = vadd.f32 %v368_v10, %v365_v24  ;;  %v404_v34 = vmul.f32 %v403_v30, %v850_v15  ;;  %v411_v36 = vstv %s1087_s4  ;;  %s1193_s30 = sld [smem:[#allocation2 + $0x785]] }
  0x57   :  { %v341_v32 = vadd.f32 %v340_v5, %v337_v21  ;;  %v401_v37 = vadd.f32 %v400_v29, %v397_v25  ;;  %v408_v38 = vmul.f32 %v407_v31, %v872_v27  ;;  %v415_v39 = vstv %s1092_s5  ;;  %s1204_s5 = sld [smem:[#allocation2 + $0x786]] }
  0x58   :  { %v419_v40 = vstv %s1094_s6  ;;  %v373_v42 = vadd.f32 %v372_v16, %v369_v33  ;;  %v380_v43 = vmul.f32 %v379_v18, %v1004_v11  ;;  %v384_v44 = vmul.f32 %v383_v19, %v1010_v62  ;;  %s1210_s6 = sld [smem:[#allocation2 + $0x787]] }
  0x59   :  { %v345_v41 = vadd.f32 %v344_v7, %v341_v32  ;;  %v388_v45 = vmul.f32 %v387_v20, %v1017_v8  ;;  %v392_v46 = vmul.f32 %v391_v28, %v1040_v23  ;;  %v405_v0 = vadd.f32 %v404_v34, %v401_v37 }
  0x5a   :  { %v412_v1 = vmul.f32 %v411_v36, %v883_v35  ;;  %v377_v48 = vadd.f32 %v376_v17, %v373_v42  ;;  %v416_v49 = vmul.f32 %v415_v39, %v924_v63  ;;  %v420_v50 = vmul.f32 %v419_v40, %v948_v22 }
  0x5b   :  { %v349_v47 = vadd.f32 %v348_v9, %v345_v41  ;;  %v409_v51 = vadd.f32 %v408_v38, %v405_v0  ;;  %v423_v52 = vstv %s1102_s7  ;;  %v427_v2 = vstv %s1104_s8  ;;  %s664_s7 = sld [smem:[#allocation2 + $0x788]]  ;;  %s665_s8 = sld [smem:[#allocation2 + $0x789]] }
  0x5c   :  { %v431_v53 = vstv %s1110_s9  ;;  %v381_v54 = vadd.f32 %v380_v43, %v377_v48  ;;  %v441_v55 = vstv %s1112_s10  ;;  %v443_v56 = vstv %s1119_s13 }
  0x5d   :  { %618 = vst [vmem:[%s1240_s2 + $0x8] sm:$0xff] %v349_v47  ;;  %v447_v3 = vstv %s1121_s14  ;;  %v413_v57 = vadd.f32 %v412_v1, %v409_v51  ;;  %v444_v58 = vmul.f32 %v443_v56, %v839_v6  ;;  %v451_v60 = vstv %s1127_s15 }
  0x5e   :  { %v448_v59 = vmul.f32 %v447_v3, %v850_v15  ;;  %v385_v61 = vadd.f32 %v384_v44, %v381_v54  ;;  %v424_v4 = vmul.f32 %v423_v52, %v1004_v11  ;;  %v435_v5 = vstv %s1131_s16 }
  0x5f   :  { %v455_v7 = vstv %s1133_s1  ;;  %v417_v9 = vadd.f32 %v416_v49, %v413_v57  ;;  %v445_v10 = vadd.f32 %v444_v58, %v441_v55  ;;  %v452_v12 = vmul.f32 %v451_v60, %v872_v27 }
  0x60   :  { %v459_v13 = vstv %s1138_s17  ;;  %v389_v14 = vadd.f32 %v388_v45, %v385_v61  ;;  %v428_v16 = vmul.f32 %v427_v2, %v1010_v62  ;;  %v463_v17 = vstv %s1142_s0 }
  0x61   :  { %v421_v18 = vadd.f32 %v420_v50, %v417_v9  ;;  %v432_v19 = vmul.f32 %v431_v53, %v1017_v8  ;;  %v449_v20 = vadd.f32 %v448_v59, %v445_v10  ;;  %v456_v21 = vmul.f32 %v455_v7, %v883_v35 }
  0x62   :  { %v393_v24 = vadd.f32 %v392_v46, %v389_v14  ;;  %v436_v25 = vmul.f32 %v435_v5, %v1040_v23  ;;  %v460_v26 = vmul.f32 %v459_v13, %v924_v63  ;;  %v467_v28 = vstv %s1149_s18 }
  0x63   :  { %v425_v29 = vadd.f32 %v424_v4, %v421_v18  ;;  %v453_v30 = vadd.f32 %v452_v12, %v449_v20  ;;  %v464_v31 = vmul.f32 %v463_v17, %v948_v22  ;;  %v471_v32 = vstv %s1151_s19 }
  0x64   :  { %630 = vst [vmem:[%s1240_s2 + $0x10] sm:$0xff] %v393_v24  ;;  %v485_v33 = vstv %s1156_s20  ;;  %v487_v34 = vstv %s1158_s21  ;;  %v491_v36 = vstv %s1166_s24  ;;  %v468_v42 = vmul.f32 %v467_v28, %v1004_v11 }
  0x65   :  { %v495_v37 = vstv %s1168_s25  ;;  %v429_v38 = vadd.f32 %v428_v16, %v425_v29  ;;  %v457_v39 = vadd.f32 %v456_v21, %v453_v30  ;;  %v488_v40 = vmul.f32 %v487_v34, %v839_v6 }
  0x66   :  { %v492_v41 = vmul.f32 %v491_v36, %v850_v15  ;;  %v499_v43 = vstv %s1176_s26  ;;  %v496_v0 = vmul.f32 %v495_v37, %v872_v27  ;;  %v472_v1 = vmul.f32 %v471_v32, %v1010_v62 }
  0x67   :  { %v433_v44 = vadd.f32 %v432_v19, %v429_v38  ;;  %v461_v45 = vadd.f32 %v460_v26, %v457_v39  ;;  %v489_v46 = vadd.f32 %v488_v40, %v485_v33  ;;  %v475_v47 = vstv %s1182_s27 }
  0x68   :  { %v503_v48 = vstv %s1184_s28  ;;  %v500_v50 = vmul.f32 %v499_v43, %v883_v35  ;;  %v479_v51 = vstv %s1191_s29  ;;  %v507_v52 = vstv %s1193_s30 }
  0x69   :  { %v437_v6 = vadd.f32 %v436_v25, %v433_v44  ;;  %v465_v15 = vadd.f32 %v464_v31, %v461_v45  ;;  %v493_v49 = vadd.f32 %v492_v41, %v489_v46  ;;  %v476_v2 = vmul.f32 %v475_v47, %v1017_v8 }
  0x6a   :  { %v504_v54 = vmul.f32 %v503_v48, %v924_v63  ;;  %v511_v55 = vstv %s1204_s5  ;;  %v480_v3 = vmul.f32 %v479_v51, %v1040_v23  ;;  %v508_v35 = vmul.f32 %v507_v52, %v948_v22 }
  0x6b   :  { %642 = vst [vmem:[%s1240_s2 + $0x18] sm:$0xff] %v437_v6  ;;  %v469_v27 = vadd.f32 %v468_v42, %v465_v15  ;;  %v497_v53 = vadd.f32 %v496_v0, %v493_v49  ;;  %v515_v58 = vstv %s1210_s6  ;;  %v512_v61 = vmul.f32 %v511_v55, %v1004_v11 }
  0x6c   :  { %v519_v4 = vstv %s664_s7  ;;  %v516_v9 = vmul.f32 %v515_v58, %v1010_v62  ;;  %v523_v10 = vstv %s665_s8 }
  0x6d   :  { %v473_v56 = vadd.f32 %v472_v1, %v469_v27  ;;  %v501_v57 = vadd.f32 %v500_v50, %v497_v53  ;;  %v520_v12 = vmul.f32 %v519_v4, %v1017_v8  ;;  %v524_v22 = vmul.f32 %v523_v10, %v1040_v23 }
  0x6f   :  { %v477_v59 = vadd.f32 %v476_v2, %v473_v56  ;;  %v505_v60 = vadd.f32 %v504_v54, %v501_v57 }
  0x71   :  { %v481_v5 = vadd.f32 %v480_v3, %v477_v59  ;;  %v509_v7 = vadd.f32 %v508_v35, %v505_v60 }
  0x73   :  { %654 = vst [vmem:[%s1240_s2 + $0x20] sm:$0xff] %v481_v5  ;;  %v513_v63 = vadd.f32 %v512_v61, %v509_v7 }
  0x75   :  { %v517_v13 = vadd.f32 %v516_v9, %v513_v63 }
  0x77   :  { %v521_v14 = vadd.f32 %v520_v12, %v517_v13 }
  0x79   :  { %v525_v16 = vadd.f32 %v524_v22, %v521_v14 }
  0x7b   :  { %666 = vst [vmem:[%s1240_s2 + $0x28] sm:$0xff] %v525_v16 }
  0x7c   :  { %532 = vsyncpa [#allocation3], 1 }

</bundles_post_ra>
